<compile_context>
chip_gen: v5e
topology: v5e:2x2
jax: 0.10.0
libtpu: 0.0.40
codegen_flags: <defaults>
</compile_context>

<pallas_src>
import functools
import math

import jax
import jax.numpy as jnp
from jax.experimental import pallas as pl
from jax.experimental.pallas import tpu as pltpu


_LANE = 128
_VMEM_LIMIT = 48 * 1024 * 1024  # fits v7x's 64 MiB physical VMEM with headroom


def _round_up(x, m):
    return ((x + m - 1) // m) * m


def _plan_tiles(n, tm=256, tk=1024):
    """Pick (row tile, contraction tile, padded N).  tk is a multiple of tm and
    n_pad is a multiple of tk (hence of tm)."""
    n128 = _round_up(n, _LANE)
    tm = max(_LANE, (int(tm) // _LANE) * _LANE)
    tm = min(tm, n128)
    tk = max(tm, (int(tk) // tm) * tm)
    tk = min(tk, _round_up(n, tm))
    n_pad = _round_up(n, tk)
    return tm, tk, n_pad


def prepare_adjacency(adj, n_pad):
    """One-time setup: pad the NxN adjacency and store it as int8 (binary adj is
    exact).  Do NOT call this per forward pass."""
    n = adj.shape[0]
    return jnp.pad(adj, ((0, n_pad - n), (0, n_pad - n))).astype(jnp.int8)


# ---------------------------------------------------------------------------
# Kernels
# ---------------------------------------------------------------------------

def _proj_kernel(x_ref, w_ref, b_ref, h_ref):
    """h = x @ W + b  (row-tiled; f32 accumulate, bf16 output for the MXU)."""
    h = jnp.dot(x_ref[...], w_ref[...], preferred_element_type=jnp.float32)
    h_ref[...] = (h + b_ref[...]).astype(h_ref.dtype)


def _agg_kernel(adj_ref, h_ref, o_ref, acc_ref, deg_ref, *, out_dim,
                apply_log_softmax):
    """o = relu((adj @ h) / (adj.sum(1) + 1e-6)) [+ log_softmax on last layer].

    Grid: (row tiles ["parallel"], contraction tiles ["arbitrary"]).
    adj block: int8 [tm, tk] -> widened to bf16 in-register; f32 VMEM accumulator.
    """
    k = pl.program_id(1)
    nk = pl.num_programs(1)

    adj_i8 = adj_ref[...]                                    # int8 [tm, tk]
    adj_bf = adj_i8.astype(jnp.bfloat16)                     # VPU widen (free-ish)
    part = jnp.dot(adj_bf, h_ref[...], preferred_element_type=jnp.float32)
    deg_part = jnp.sum(adj_i8.astype(jnp.float32), axis=1, keepdims=True)

    @pl.when(k == 0)
    def _():
        acc_ref[...] = part
        deg_ref[...] = deg_part

    @pl.when(k > 0)
    def _():
        acc_ref[...] += part
        deg_ref[...] += deg_part

    @pl.when(k == nk - 1)
    def _():
        inv_deg = pl.reciprocal(deg_ref[...] + 1e-6, approx=True)
        z = jnp.maximum(acc_ref[...] * inv_deg, 0.0)
        if apply_log_softmax:
            # Mask padded output columns so they do not pollute the softmax.
            col = jax.lax.broadcasted_iota(jnp.int32, z.shape, 1)
            z = jnp.where(col < out_dim, z, jnp.float32(-1e30))
            m = jnp.max(z, axis=1, keepdims=True)
            zz = z - m
            lse = jnp.log(jnp.sum(jnp.exp(zz), axis=1, keepdims=True))
            z = zz - lse
        o_ref[...] = z.astype(o_ref.dtype)


# ---------------------------------------------------------------------------
# pallas_call wrappers
# ---------------------------------------------------------------------------

def _project(x, w, b, tm):
    n_pad, f = x.shape
    h_dim = w.shape[1]
    return pl.pallas_call(
        _proj_kernel,
        out_shape=jax.ShapeDtypeStruct((n_pad, h_dim), jnp.bfloat16),
        grid_spec=pltpu.PrefetchScalarGridSpec(
            num_scalar_prefetch=0,
            grid=(n_pad // tm,),
            in_specs=[
                pl.BlockSpec((tm, f), lambda i: (i, 0)),
                pl.BlockSpec((f, h_dim), lambda i: (0, 0)),
                pl.BlockSpec((1, h_dim), lambda i: (0, 0)),
            ],
            out_specs=pl.BlockSpec((tm, h_dim), lambda i: (i, 0)),
        ),
        compiler_params=pltpu.CompilerParams(
            dimension_semantics=("parallel",),
            vmem_limit_bytes=_VMEM_LIMIT),
    )(x, w, b)


def _aggregate(adj_i8, h, tm, tk, *, out_dtype, out_dim, apply_log_softmax):
    n_pad = adj_i8.shape[0]
    h_dim = h.shape[1]
    kernel = functools.partial(_agg_kernel, out_dim=out_dim,
                               apply_log_softmax=apply_log_softmax)
    return pl.pallas_call(
        kernel,
        out_shape=jax.ShapeDtypeStruct((n_pad, h_dim), out_dtype),
        grid_spec=pltpu.PrefetchScalarGridSpec(
            num_scalar_prefetch=0,
            grid=(n_pad // tm, n_pad // tk),
            in_specs=[
                pl.BlockSpec((tm, tk), lambda i, k: (i, k)),     # adj (int8)
                pl.BlockSpec((tk, h_dim), lambda i, k: (k, 0)),  # h K-tile (bf16)
            ],
            out_specs=pl.BlockSpec((tm, h_dim), lambda i, k: (i, 0)),
            scratch_shapes=[pltpu.VMEM((tm, h_dim), jnp.float32),
                            pltpu.VMEM((tm, 1), jnp.float32)],
        ),
        compiler_params=pltpu.CompilerParams(
            dimension_semantics=("parallel", "arbitrary"),
            vmem_limit_bytes=_VMEM_LIMIT),
    )(adj_i8, h)


@functools.partial(jax.jit, static_argnames=("tm", "tk"))
def graphsage_forward(x, adj_i8, w1, b1, w2, b2, *, tm, tk):
    """x: [N, in_dim] f32, adj_i8: [N_pad, N_pad] int8 (from prepare_adjacency),
    w1: [in_dim, nhid], b1: [1, nhid], w2: [nhid, out], b2: [1, out]
    -> [N, out] log-probabilities."""
    n, f_in = x.shape
    n_pad = adj_i8.shape[0]
    nhid = w1.shape[1]
    out_dim = w2.shape[1]

    # Lane-dense feature padding (multiples of 128).  These pads are tiny (O(N*F)).
    f_p = _round_up(f_in, _LANE)
    h_p = _round_up(nhid, _LANE)
    out_p = _round_up(out_dim, _LANE)

    xp = jnp.pad(x.astype(jnp.float32), ((0, n_pad - n), (0, f_p - f_in)))
    w1p = jnp.pad(w1.astype(jnp.float32), ((0, f_p - f_in), (0, h_p - nhid)))
    b1p = jnp.pad(b1.astype(jnp.float32), ((0, 0), (0, h_p - nhid)))
    w2p = jnp.pad(w2.astype(jnp.float32), ((0, h_p - nhid), (0, out_p - out_dim)))
    b2p = jnp.pad(b2.astype(jnp.float32), ((0, 0), (0, out_p - out_dim)))

    # ---- Layer 1: hoisted projection, then adj-streaming aggregation ----
    h1 = _project(xp, w1p, b1p, tm)                                    # bf16
    x1 = _aggregate(adj_i8, h1, tm, tk, out_dtype=jnp.bfloat16,
                    out_dim=nhid, apply_log_softmax=False)

    # ---- Layer 2 + log_softmax ----
    h2 = _project(x1, w2p, b2p, tm)                                    # bf16
    out = _aggregate(adj_i8, h2, tm, tk, out_dtype=jnp.float32,
                     out_dim=out_dim, apply_log_softmax=True)

    return out[:n, :out_dim]


# ---------------------------------------------------------------------------
# Reference / test
# ---------------------------------------------------------------------------

def _init_linear(key, in_features, out_features):
    # PyTorch nn.Linear default init: U(-1/sqrt(in), 1/sqrt(in)) for W and b.
    kw, kb = jax.random.split(key)
    bound = 1.0 / math.sqrt(in_features)
    w = jax.random.uniform(kw, (in_features, out_features), jnp.float32,
                           minval=-bound, maxval=bound)
    b = jax.random.uniform(kb, (1, out_features), jnp.float32,
                           minval=-bound, maxval=bound)
    return w, b


def _reference(x, adj, w1, b1, w2, b2):
    deg = jnp.sum(adj, axis=1, keepdims=True) + 1e-6
    h = x @ w1 + b1
    h = jax.nn.relu((adj @ h) / deg)
    h = h @ w2 + b2
    h = jax.nn.relu((adj @ h) / deg)
    return jax.nn.log_softmax(h, axis=1)


def _rand_graph(key, n, in_dim, density):
    kx, kadj = jax.random.split(key)
    x = jax.random.normal(kx, (n, in_dim), jnp.float32)
    adj = (jax.random.uniform(kadj, (n, n)) < density).astype(jnp.float32)
    adj = jnp.maximum(adj, jnp.eye(n, dtype=jnp.float32))  # self-loops -> deg > 0
    return x, adj


if __name__ == "__main__":
    # config_emb = {'input_dim': 16, 'nhid': 32, 'out': 16, 'dropout': 0.5}
    IN_DIM, NHID, OUT = 16, 32, 16

    key = jax.random.PRNGKey(0)
    kg, k1, k2 = jax.random.split(key, 3)
    w1, b1 = _init_linear(k1, IN_DIM, NHID)
    w2, b2 = _init_linear(k2, NHID, OUT)

    # Small graph: single-tile grid.
    x, adj = _rand_graph(kg, 8, IN_DIM, 0.4)
    tm, tk, n_pad = _plan_tiles(8)
    adj_i8 = prepare_adjacency(adj, n_pad)          # one-time setup (not per call)
    out = jax.block_until_ready(
        graphsage_forward(x, adj_i8, w1, b1, w2, b2, tm=tm, tk=tk))
    ref = _reference(x, adj, w1, b1, w2, b2)
    assert out.shape == (8, OUT)
    assert jnp.allclose(out, ref, atol=2e-2, rtol=2e-2)

    # Larger graph exercising the multi-tile (3 row x 3 K) grid and the K-tile
    # accumulation / pl.when init-finalize path, with row/column padding (N=320).
    x2, adj2 = _rand_graph(jax.random.PRNGKey(1), 320, IN_DIM, 0.05)
    tm2, tk2, n_pad2 = _plan_tiles(320, tm=128, tk=128)
    adj2_i8 = prepare_adjacency(adj2, n_pad2)
    out2 = jax.block_until_ready(
        graphsage_forward(x2, adj2_i8, w1, b1, w2, b2, tm=tm2, tk=tk2))
    ref2 = _reference(x2, adj2, w1, b1, w2, b2)
    assert out2.shape == (320, OUT)
    assert jnp.allclose(out2, ref2, atol=2e-2, rtol=2e-2)

    # Same graph with the default (large-tile, rectangular adj block) plan.
    tm3, tk3, n_pad3 = _plan_tiles(320)
    adj3_i8 = prepare_adjacency(adj2, n_pad3)
    out3 = jax.block_until_ready(
        graphsage_forward(x2, adj3_i8, w1, b1, w2, b2, tm=tm3, tk=tk3))
    assert out3.shape == (320, OUT)
    assert jnp.allclose(out3, ref2, atol=2e-2, rtol=2e-2)

    print("KERNEL_OK")
</pallas_src>

<mosaic_0001>
module attributes {stable_mosaic.version = 11 : i64} {
  func.func @_proj_kernel(%arg0: i32, %arg1: memref<128x128xf32, #tpu.memory_space<vmem>>, %arg2: memref<128x128xf32, #tpu.memory_space<vmem>>, %arg3: memref<1x128xf32, #tpu.memory_space<vmem>>, %arg4: memref<128x128xbf16, #tpu.memory_space<vmem>>) attributes {dimension_semantics = [#tpu.dimension_semantics<parallel>], iteration_bounds = array<i64: 1>, scalar_prefetch = 0 : i64, scratch_operands = 0 : i64, tpu.core_type = #tpu.core_type<tc>, window_params = [{transform_indices = @transform_0, window_bounds = array<i64: 128, 128>}, {pipeline_mode = #tpu.pipeline_mode<synchronous>, transform_indices = @transform_1, window_bounds = array<i64: 128, 128>}, {pipeline_mode = #tpu.pipeline_mode<synchronous>, transform_indices = @transform_2, window_bounds = array<i64: 1, 128>}, {transform_indices = @transform_3, window_bounds = array<i64: 128, 128>}]} {
    %c0 = arith.constant 0 : index
    %c0_0 = arith.constant 0 : index
    %0 = vector.load %arg1[%c0, %c0_0] : memref<128x128xf32, #tpu.memory_space<vmem>>, vector<128x128xf32>
    %c0_1 = arith.constant 0 : index
    %c0_2 = arith.constant 0 : index
    %1 = vector.load %arg2[%c0_1, %c0_2] : memref<128x128xf32, #tpu.memory_space<vmem>>, vector<128x128xf32>
    %cst = arith.constant dense<0.000000e+00> : vector<128x128xf32>
    %2 = tpu.matmul %0, %1, %cst {dimension_numbers = #tpu.dot_dimension_numbers<[1], [0], [0], [1], [0, 0, 1, 1], [], []>} : vector<128x128xf32>, vector<128x128xf32>, vector<128x128xf32> -> vector<128x128xf32>
    %c0_3 = arith.constant 0 : index
    %c0_4 = arith.constant 0 : index
    %3 = vector.load %arg3[%c0_3, %c0_4] : memref<1x128xf32, #tpu.memory_space<vmem>>, vector<1x128xf32>
    %4 = vector.broadcast %3 : vector<1x128xf32> to vector<128x128xf32>
    %5 = arith.addf %2, %4 : vector<128x128xf32>
    %6 = arith.truncf %5 : vector<128x128xf32> to vector<128x128xbf16>
    %c0_5 = arith.constant 0 : index
    %c0_6 = arith.constant 0 : index
    %7 = vector.load %arg4[%c0_5, %c0_6] : memref<128x128xbf16, #tpu.memory_space<vmem>>, vector<128x128xbf16>
    tpu.vector_store %arg4[%c0_5, %c0_6], %6 {strides = array<i32>} : memref<128x128xbf16, #tpu.memory_space<vmem>>, vector<128x128xbf16>,
    return
  }
  func.func @transform_0(%arg0: i32) -> (i32, i32) {
    %c0_i32 = arith.constant 0 : i32
    %c0_i32_0 = arith.constant 0 : i32
    return %arg0, %c0_i32 : i32, i32
  }
  func.func @transform_1(%arg0: i32) -> (i32, i32) {
    %c0_i32 = arith.constant 0 : i32
    %c0_i32_0 = arith.constant 0 : i32
    %c0_i32_1 = arith.constant 0 : i32
    return %c0_i32, %c0_i32_0 : i32, i32
  }
  func.func @transform_2(%arg0: i32) -> (i32, i32) {
    %c0_i32 = arith.constant 0 : i32
    %c0_i32_0 = arith.constant 0 : i32
    %c0_i32_1 = arith.constant 0 : i32
    return %c0_i32, %c0_i32_0 : i32, i32
  }
  func.func @transform_3(%arg0: i32) -> (i32, i32) {
    %c0_i32 = arith.constant 0 : i32
    %c0_i32_0 = arith.constant 0 : i32
    return %arg0, %c0_i32 : i32, i32
  }
}

module attributes {stable_mosaic.version = 11 : i64} {
  func.func @_agg_kernel(%arg0: i32, %arg1: i32, %arg2: memref<128x128xi8, #tpu.memory_space<vmem>>, %arg3: memref<128x128xbf16, #tpu.memory_space<vmem>>, %arg4: memref<128x128xbf16, #tpu.memory_space<vmem>>, %arg5: memref<128x128xf32, #tpu.memory_space<vmem>>, %arg6: memref<128x1xf32, #tpu.memory_space<vmem>>) attributes {dimension_semantics = [#tpu.dimension_semantics<parallel>, #tpu.dimension_semantics<arbitrary>], iteration_bounds = array<i64: 1, 1>, scalar_prefetch = 0 : i64, scratch_operands = 2 : i64, tpu.core_type = #tpu.core_type<tc>, window_params = [{transform_indices = @transform_0, window_bounds = array<i64: 128, 128>}, {transform_indices = @transform_1, window_bounds = array<i64: 128, 128>}, {transform_indices = @transform_2, window_bounds = array<i64: 128, 128>}]} {
    %c0 = arith.constant 0 : index
    %c0_0 = arith.constant 0 : index
    %0 = vector.load %arg2[%c0, %c0_0] : memref<128x128xi8, #tpu.memory_space<vmem>>, vector<128x128xi8>
    %1 = arith.sitofp %0 : vector<128x128xi8> to vector<128x128xbf16>
    %c0_1 = arith.constant 0 : index
    %c0_2 = arith.constant 0 : index
    %2 = vector.load %arg3[%c0_1, %c0_2] : memref<128x128xbf16, #tpu.memory_space<vmem>>, vector<128x128xbf16>
    %cst = arith.constant dense<0.000000e+00> : vector<128x128xf32>
    %3 = tpu.matmul %1, %2, %cst {dimension_numbers = #tpu.dot_dimension_numbers<[1], [0], [0], [1], [0, 0, 1, 1], [], []>} : vector<128x128xbf16>, vector<128x128xbf16>, vector<128x128xf32> -> vector<128x128xf32>
    %4 = arith.sitofp %0 : vector<128x128xi8> to vector<128x128xf32>
    %cst_3 = arith.constant dense<0.000000e+00> : vector<128xf32>
    %5 = vector.multi_reduction <add>, %4, %cst_3 [1] : vector<128x128xf32> to vector<128xf32>
    %6 = vector.shape_cast %5 : vector<128xf32> to vector<128x1xf32>
    %c0_i32 = arith.constant 0 : i32
    %7 = arith.cmpi eq, %arg1, %c0_i32 : i32
    %8 = arith.extui %7 : i1 to i32
    %c0_i32_4 = arith.constant 0 : i32
    %9 = arith.cmpi ne, %8, %c0_i32_4 : i32
    scf.if %9 {
      %c0_9 = arith.constant 0 : index
      %c0_10 = arith.constant 0 : index
      %16 = vector.load %arg5[%c0_9, %c0_10] : memref<128x128xf32, #tpu.memory_space<vmem>>, vector<128x128xf32>
      tpu.vector_store %arg5[%c0_9, %c0_10], %3 {strides = array<i32>} : memref<128x128xf32, #tpu.memory_space<vmem>>, vector<128x128xf32>,
      %c0_11 = arith.constant 0 : index
      %c0_12 = arith.constant 0 : index
      %17 = vector.load %arg6[%c0_11, %c0_12] : memref<128x1xf32, #tpu.memory_space<vmem>>, vector<128x1xf32>
      tpu.vector_store %arg6[%c0_11, %c0_12], %6 {strides = array<i32>} : memref<128x1xf32, #tpu.memory_space<vmem>>, vector<128x1xf32>,
    } else {
    }
    %c0_i32_5 = arith.constant 0 : i32
    %10 = arith.cmpi sgt, %arg1, %c0_i32_5 : i32
    %11 = arith.extui %10 : i1 to i32
    %c0_i32_6 = arith.constant 0 : i32
    %12 = arith.cmpi ne, %11, %c0_i32_6 : i32
    scf.if %12 {
      %c0_9 = arith.constant 0 : index
      %c0_10 = arith.constant 0 : index
      %16 = vector.load %arg5[%c0_9, %c0_10] : memref<128x128xf32, #tpu.memory_space<vmem>>, vector<128x128xf32>
      %17 = arith.addf %16, %3 : vector<128x128xf32>
      %c0_11 = arith.constant 0 : index
      %c0_12 = arith.constant 0 : index
      %18 = vector.load %arg5[%c0_11, %c0_12] : memref<128x128xf32, #tpu.memory_space<vmem>>, vector<128x128xf32>
      tpu.vector_store %arg5[%c0_11, %c0_12], %17 {strides = array<i32>} : memref<128x128xf32, #tpu.memory_space<vmem>>, vector<128x128xf32>,
      %c0_13 = arith.constant 0 : index
      %c0_14 = arith.constant 0 : index
      %19 = vector.load %arg6[%c0_13, %c0_14] : memref<128x1xf32, #tpu.memory_space<vmem>>, vector<128x1xf32>
      %20 = arith.addf %19, %6 : vector<128x1xf32>
      %c0_15 = arith.constant 0 : index
      %c0_16 = arith.constant 0 : index
      %21 = vector.load %arg6[%c0_15, %c0_16] : memref<128x1xf32, #tpu.memory_space<vmem>>, vector<128x1xf32>
      tpu.vector_store %arg6[%c0_15, %c0_16], %20 {strides = array<i32>} : memref<128x1xf32, #tpu.memory_space<vmem>>, vector<128x1xf32>,
    } else {
    }
    %c0_i32_7 = arith.constant 0 : i32
    %13 = arith.cmpi eq, %arg1, %c0_i32_7 : i32
    %14 = arith.extui %13 : i1 to i32
    %c0_i32_8 = arith.constant 0 : i32
    %15 = arith.cmpi ne, %14, %c0_i32_8 : i32
    scf.if %15 {
      %c0_9 = arith.constant 0 : index
      %c0_10 = arith.constant 0 : index
      %16 = vector.load %arg6[%c0_9, %c0_10] : memref<128x1xf32, #tpu.memory_space<vmem>>, vector<128x1xf32>
      %cst_11 = arith.constant 9.99999997E-7 : f32
      %17 = vector.broadcast %cst_11 : f32 to vector<128x1xf32>
      %18 = arith.addf %16, %17 : vector<128x1xf32>
      %19 = tpu.reciprocal %18 {approx = true} : vector<128x1xf32> -> vector<128x1xf32>
      %c0_12 = arith.constant 0 : index
      %c0_13 = arith.constant 0 : index
      %20 = vector.load %arg5[%c0_12, %c0_13] : memref<128x128xf32, #tpu.memory_space<vmem>>, vector<128x128xf32>
      %21 = vector.broadcast %19 : vector<128x1xf32> to vector<128x128xf32>
      %22 = arith.mulf %20, %21 : vector<128x128xf32>
      %cst_14 = arith.constant 0.000000e+00 : f32
      %23 = vector.broadcast %cst_14 : f32 to vector<128x128xf32>
      %24 = arith.maximumf %22, %23 : vector<128x128xf32>
      %25 = arith.truncf %24 : vector<128x128xf32> to vector<128x128xbf16>
      %c0_15 = arith.constant 0 : index
      %c0_16 = arith.constant 0 : index
      %26 = vector.load %arg4[%c0_15, %c0_16] : memref<128x128xbf16, #tpu.memory_space<vmem>>, vector<128x128xbf16>
      tpu.vector_store %arg4[%c0_15, %c0_16], %25 {strides = array<i32>} : memref<128x128xbf16, #tpu.memory_space<vmem>>, vector<128x128xbf16>,
    } else {
    }
    return
  }
  func.func @transform_0(%arg0: i32, %arg1: i32) -> (i32, i32) {
    %c0_i32 = arith.constant 0 : i32
    return %arg0, %arg1 : i32, i32
  }
  func.func @transform_1(%arg0: i32, %arg1: i32) -> (i32, i32) {
    %c0_i32 = arith.constant 0 : i32
    %c0_i32_0 = arith.constant 0 : i32
    return %arg1, %c0_i32 : i32, i32
  }
  func.func @transform_2(%arg0: i32, %arg1: i32) -> (i32, i32) {
    %c0_i32 = arith.constant 0 : i32
    %c0_i32_0 = arith.constant 0 : i32
    return %arg0, %c0_i32 : i32, i32
  }
}

module attributes {stable_mosaic.version = 11 : i64} {
  func.func @_proj_kernel(%arg0: i32, %arg1: memref<128x128xbf16, #tpu.memory_space<vmem>>, %arg2: memref<128x128xf32, #tpu.memory_space<vmem>>, %arg3: memref<1x128xf32, #tpu.memory_space<vmem>>, %arg4: memref<128x128xbf16, #tpu.memory_space<vmem>>) attributes {dimension_semantics = [#tpu.dimension_semantics<parallel>], iteration_bounds = array<i64: 1>, scalar_prefetch = 0 : i64, scratch_operands = 0 : i64, tpu.core_type = #tpu.core_type<tc>, window_params = [{transform_indices = @transform_0, window_bounds = array<i64: 128, 128>}, {pipeline_mode = #tpu.pipeline_mode<synchronous>, transform_indices = @transform_1, window_bounds = array<i64: 128, 128>}, {pipeline_mode = #tpu.pipeline_mode<synchronous>, transform_indices = @transform_2, window_bounds = array<i64: 1, 128>}, {transform_indices = @transform_3, window_bounds = array<i64: 128, 128>}]} {
    %c0 = arith.constant 0 : index
    %c0_0 = arith.constant 0 : index
    %0 = vector.load %arg1[%c0, %c0_0] : memref<128x128xbf16, #tpu.memory_space<vmem>>, vector<128x128xbf16>
    %c0_1 = arith.constant 0 : index
    %c0_2 = arith.constant 0 : index
    %1 = vector.load %arg2[%c0_1, %c0_2] : memref<128x128xf32, #tpu.memory_space<vmem>>, vector<128x128xf32>
    %cst = arith.constant dense<0.000000e+00> : vector<128x128xf32>
    %2 = tpu.matmul %0, %1, %cst {dimension_numbers = #tpu.dot_dimension_numbers<[1], [0], [0], [1], [0, 0, 1, 1], [], []>} : vector<128x128xbf16>, vector<128x128xf32>, vector<128x128xf32> -> vector<128x128xf32>
    %c0_3 = arith.constant 0 : index
    %c0_4 = arith.constant 0 : index
    %3 = vector.load %arg3[%c0_3, %c0_4] : memref<1x128xf32, #tpu.memory_space<vmem>>, vector<1x128xf32>
    %4 = vector.broadcast %3 : vector<1x128xf32> to vector<128x128xf32>
    %5 = arith.addf %2, %4 : vector<128x128xf32>
    %6 = arith.truncf %5 : vector<128x128xf32> to vector<128x128xbf16>
    %c0_5 = arith.constant 0 : index
    %c0_6 = arith.constant 0 : index
    %7 = vector.load %arg4[%c0_5, %c0_6] : memref<128x128xbf16, #tpu.memory_space<vmem>>, vector<128x128xbf16>
    tpu.vector_store %arg4[%c0_5, %c0_6], %6 {strides = array<i32>} : memref<128x128xbf16, #tpu.memory_space<vmem>>, vector<128x128xbf16>,
    return
  }
  func.func @transform_0(%arg0: i32) -> (i32, i32) {
    %c0_i32 = arith.constant 0 : i32
    %c0_i32_0 = arith.constant 0 : i32
    return %arg0, %c0_i32 : i32, i32
  }
  func.func @transform_1(%arg0: i32) -> (i32, i32) {
    %c0_i32 = arith.constant 0 : i32
    %c0_i32_0 = arith.constant 0 : i32
    %c0_i32_1 = arith.constant 0 : i32
    return %c0_i32, %c0_i32_0 : i32, i32
  }
  func.func @transform_2(%arg0: i32) -> (i32, i32) {
    %c0_i32 = arith.constant 0 : i32
    %c0_i32_0 = arith.constant 0 : i32
    %c0_i32_1 = arith.constant 0 : i32
    return %c0_i32, %c0_i32_0 : i32, i32
  }
  func.func @transform_3(%arg0: i32) -> (i32, i32) {
    %c0_i32 = arith.constant 0 : i32
    %c0_i32_0 = arith.constant 0 : i32
    return %arg0, %c0_i32 : i32, i32
  }
}

module attributes {stable_mosaic.version = 11 : i64} {
  func.func @_agg_kernel(%arg0: i32, %arg1: i32, %arg2: memref<128x128xi8, #tpu.memory_space<vmem>>, %arg3: memref<128x128xbf16, #tpu.memory_space<vmem>>, %arg4: memref<128x128xf32, #tpu.memory_space<vmem>>, %arg5: memref<128x128xf32, #tpu.memory_space<vmem>>, %arg6: memref<128x1xf32, #tpu.memory_space<vmem>>) attributes {dimension_semantics = [#tpu.dimension_semantics<parallel>, #tpu.dimension_semantics<arbitrary>], iteration_bounds = array<i64: 1, 1>, scalar_prefetch = 0 : i64, scratch_operands = 2 : i64, tpu.core_type = #tpu.core_type<tc>, window_params = [{transform_indices = @transform_0, window_bounds = array<i64: 128, 128>}, {transform_indices = @transform_1, window_bounds = array<i64: 128, 128>}, {transform_indices = @transform_2, window_bounds = array<i64: 128, 128>}]} {
    %c0 = arith.constant 0 : index
    %c0_0 = arith.constant 0 : index
    %0 = vector.load %arg2[%c0, %c0_0] : memref<128x128xi8, #tpu.memory_space<vmem>>, vector<128x128xi8>
    %1 = arith.sitofp %0 : vector<128x128xi8> to vector<128x128xbf16>
    %c0_1 = arith.constant 0 : index
    %c0_2 = arith.constant 0 : index
    %2 = vector.load %arg3[%c0_1, %c0_2] : memref<128x128xbf16, #tpu.memory_space<vmem>>, vector<128x128xbf16>
    %cst = arith.constant dense<0.000000e+00> : vector<128x128xf32>
    %3 = tpu.matmul %1, %2, %cst {dimension_numbers = #tpu.dot_dimension_numbers<[1], [0], [0], [1], [0, 0, 1, 1], [], []>} : vector<128x128xbf16>, vector<128x128xbf16>, vector<128x128xf32> -> vector<128x128xf32>
    %4 = arith.sitofp %0 : vector<128x128xi8> to vector<128x128xf32>
    %cst_3 = arith.constant dense<0.000000e+00> : vector<128xf32>
    %5 = vector.multi_reduction <add>, %4, %cst_3 [1] : vector<128x128xf32> to vector<128xf32>
    %6 = vector.shape_cast %5 : vector<128xf32> to vector<128x1xf32>
    %c0_i32 = arith.constant 0 : i32
    %7 = arith.cmpi eq, %arg1, %c0_i32 : i32
    %8 = arith.extui %7 : i1 to i32
    %c0_i32_4 = arith.constant 0 : i32
    %9 = arith.cmpi ne, %8, %c0_i32_4 : i32
    scf.if %9 {
      %c0_9 = arith.constant 0 : index
      %c0_10 = arith.constant 0 : index
      %16 = vector.load %arg5[%c0_9, %c0_10] : memref<128x128xf32, #tpu.memory_space<vmem>>, vector<128x128xf32>
      tpu.vector_store %arg5[%c0_9, %c0_10], %3 {strides = array<i32>} : memref<128x128xf32, #tpu.memory_space<vmem>>, vector<128x128xf32>,
      %c0_11 = arith.constant 0 : index
      %c0_12 = arith.constant 0 : index
      %17 = vector.load %arg6[%c0_11, %c0_12] : memref<128x1xf32, #tpu.memory_space<vmem>>, vector<128x1xf32>
      tpu.vector_store %arg6[%c0_11, %c0_12], %6 {strides = array<i32>} : memref<128x1xf32, #tpu.memory_space<vmem>>, vector<128x1xf32>,
    } else {
    }
    %c0_i32_5 = arith.constant 0 : i32
    %10 = arith.cmpi sgt, %arg1, %c0_i32_5 : i32
    %11 = arith.extui %10 : i1 to i32
    %c0_i32_6 = arith.constant 0 : i32
    %12 = arith.cmpi ne, %11, %c0_i32_6 : i32
    scf.if %12 {
      %c0_9 = arith.constant 0 : index
      %c0_10 = arith.constant 0 : index
      %16 = vector.load %arg5[%c0_9, %c0_10] : memref<128x128xf32, #tpu.memory_space<vmem>>, vector<128x128xf32>
      %17 = arith.addf %16, %3 : vector<128x128xf32>
      %c0_11 = arith.constant 0 : index
      %c0_12 = arith.constant 0 : index
      %18 = vector.load %arg5[%c0_11, %c0_12] : memref<128x128xf32, #tpu.memory_space<vmem>>, vector<128x128xf32>
      tpu.vector_store %arg5[%c0_11, %c0_12], %17 {strides = array<i32>} : memref<128x128xf32, #tpu.memory_space<vmem>>, vector<128x128xf32>,
      %c0_13 = arith.constant 0 : index
      %c0_14 = arith.constant 0 : index
      %19 = vector.load %arg6[%c0_13, %c0_14] : memref<128x1xf32, #tpu.memory_space<vmem>>, vector<128x1xf32>
      %20 = arith.addf %19, %6 : vector<128x1xf32>
      %c0_15 = arith.constant 0 : index
      %c0_16 = arith.constant 0 : index
      %21 = vector.load %arg6[%c0_15, %c0_16] : memref<128x1xf32, #tpu.memory_space<vmem>>, vector<128x1xf32>
      tpu.vector_store %arg6[%c0_15, %c0_16], %20 {strides = array<i32>} : memref<128x1xf32, #tpu.memory_space<vmem>>, vector<128x1xf32>,
    } else {
    }
    %c0_i32_7 = arith.constant 0 : i32
    %13 = arith.cmpi eq, %arg1, %c0_i32_7 : i32
    %14 = arith.extui %13 : i1 to i32
    %c0_i32_8 = arith.constant 0 : i32
    %15 = arith.cmpi ne, %14, %c0_i32_8 : i32
    scf.if %15 {
      %c0_9 = arith.constant 0 : index
      %c0_10 = arith.constant 0 : index
      %16 = vector.load %arg6[%c0_9, %c0_10] : memref<128x1xf32, #tpu.memory_space<vmem>>, vector<128x1xf32>
      %cst_11 = arith.constant 9.99999997E-7 : f32
      %17 = vector.broadcast %cst_11 : f32 to vector<128x1xf32>
      %18 = arith.addf %16, %17 : vector<128x1xf32>
      %19 = tpu.reciprocal %18 {approx = true} : vector<128x1xf32> -> vector<128x1xf32>
      %c0_12 = arith.constant 0 : index
      %c0_13 = arith.constant 0 : index
      %20 = vector.load %arg5[%c0_12, %c0_13] : memref<128x128xf32, #tpu.memory_space<vmem>>, vector<128x128xf32>
      %21 = vector.broadcast %19 : vector<128x1xf32> to vector<128x128xf32>
      %22 = arith.mulf %20, %21 : vector<128x128xf32>
      %cst_14 = arith.constant 0.000000e+00 : f32
      %23 = vector.broadcast %cst_14 : f32 to vector<128x128xf32>
      %24 = arith.maximumf %22, %23 : vector<128x128xf32>
      %25 = tpu.iota {dimensions = array<i32: 1>} : vector<128x128xi32>
      %c16_i32 = arith.constant 16 : i32
      %26 = vector.broadcast %c16_i32 : i32 to vector<128x128xi32>
      %27 = arith.cmpi slt, %25, %26 : vector<128x128xi32>
      %cst_15 = arith.constant -1.000000e+30 : f32
      %28 = vector.broadcast %cst_15 : f32 to vector<128x128xf32>
      %29 = arith.select %27, %24, %28 : vector<128x128xi1>, vector<128x128xf32>
      %cst_16 = arith.constant dense<0xFF800000> : vector<128xf32>
      %30 = vector.multi_reduction <maximumf>, %29, %cst_16 [1] : vector<128x128xf32> to vector<128xf32>
      %31 = vector.shape_cast %30 : vector<128xf32> to vector<128x1xf32>
      %32 = vector.broadcast %31 : vector<128x1xf32> to vector<128x128xf32>
      %33 = arith.subf %29, %32 : vector<128x128xf32>
      %34 = math.exp %33 : vector<128x128xf32>
      %cst_17 = arith.constant dense<0.000000e+00> : vector<128xf32>
      %35 = vector.multi_reduction <add>, %34, %cst_17 [1] : vector<128x128xf32> to vector<128xf32>
      %36 = vector.shape_cast %35 : vector<128xf32> to vector<128x1xf32>
      %37 = math.log %36 : vector<128x1xf32>
      %38 = vector.broadcast %37 : vector<128x1xf32> to vector<128x128xf32>
      %39 = arith.subf %33, %38 : vector<128x128xf32>
      %c0_18 = arith.constant 0 : index
      %c0_19 = arith.constant 0 : index
      %40 = vector.load %arg4[%c0_18, %c0_19] : memref<128x128xf32, #tpu.memory_space<vmem>>, vector<128x128xf32>
      tpu.vector_store %arg4[%c0_18, %c0_19], %39 {strides = array<i32>} : memref<128x128xf32, #tpu.memory_space<vmem>>, vector<128x128xf32>,
    } else {
    }
    return
  }
  func.func @transform_0(%arg0: i32, %arg1: i32) -> (i32, i32) {
    %c0_i32 = arith.constant 0 : i32
    return %arg0, %arg1 : i32, i32
  }
  func.func @transform_1(%arg0: i32, %arg1: i32) -> (i32, i32) {
    %c0_i32 = arith.constant 0 : i32
    %c0_i32_0 = arith.constant 0 : i32
    return %arg1, %c0_i32 : i32, i32
  }
  func.func @transform_2(%arg0: i32, %arg1: i32) -> (i32, i32) {
    %c0_i32 = arith.constant 0 : i32
    %c0_i32_0 = arith.constant 0 : i32
    return %arg0, %c0_i32 : i32, i32
  }
}

</mosaic_0001>

<bundles_post_ra>
// kernel: graphsage_forward.4
= control target key start
LH: loop header
LB: loop body
LE: loop exit
PB: predicated region body
PF: predicated region fallthrough
CT: control target
= control target key end

     0   :  { %s390_s1 = inlined_call_operand.vmem [shape: f32[128,128], index: 1, kind: input, shape index: {}]   ;;  %s391_s2 = inlined_call_operand.vmem [shape: f32[1,128], index: 2, kind: input, shape index: {}]   ;;  %s392_s0 = inlined_call_operand.vmem [shape: f32[128,128], index: 0, kind: input, shape index: {}]   ;;  %s393_s3 = inlined_call_operand.vmem [shape: bf16[128,128], index: 3, kind: output, shape index: {}]  }
   0x1   :  { %v45_v0 = vld [vmem:[%s390_s1 + $0x78] sm:$0xff]  ;;  %v44_v1 = vld [vmem:[%s390_s1 + $0x70] sm:$0xff]  ;;  %v43_v2 = vld [vmem:[%s390_s1 + $0x68] sm:$0xff] }
   0x2   :  { %50 = vmatpush.msra.mxu0 %v45_v0  ;;  %198 = vmatpush.msra.mxu1 %v45_v0  ;;  %v42_v3 = vld [vmem:[%s390_s1 + $0x60] sm:$0xff]  ;;  %v41_v4 = vld [vmem:[%s390_s1 + $0x58] sm:$0xff]  ;;  %v40_v5 = vld [vmem:[%s390_s1 + $0x50] sm:$0xff] }
   0x3   :  { %199 = vmatpush.msra.mxu2 %v45_v0  ;;  %200 = vmatpush.msra.mxu3 %v45_v0  ;;  %v39_v6 = vld [vmem:[%s390_s1 + $0x48] sm:$0xff]  ;;  %v38_v7 = vld [vmem:[%s390_s1 + $0x40] sm:$0xff]  ;;  %v37_v8 = vld [vmem:[%s390_s1 + $0x38] sm:$0xff] }
   0x4   :  { %51 = vmatpush.msra.mxu0 %v44_v1  ;;  %201 = vmatpush.msra.mxu1 %v44_v1  ;;  %v36_v9 = vld [vmem:[%s390_s1 + $0x30] sm:$0xff]  ;;  %v35_v10 = vld [vmem:[%s390_s1 + $0x28] sm:$0xff]  ;;  %v34_v11 = vld [vmem:[%s390_s1 + $0x20] sm:$0xff] }
   0x5   :  { %202 = vmatpush.msra.mxu2 %v44_v1  ;;  %203 = vmatpush.msra.mxu3 %v44_v1  ;;  %v33_v12 = vld [vmem:[%s390_s1 + $0x18] sm:$0xff]  ;;  %v32_v13 = vld [vmem:[%s390_s1 + $0x10] sm:$0xff]  ;;  %v31_v14 = vld [vmem:[%s390_s1 + $0x8] sm:$0xff] }
   0x6   :  { %52 = vmatpush.msra.mxu0 %v43_v2  ;;  %204 = vmatpush.msra.mxu1 %v43_v2  ;;  %v30_v15 = vld [vmem:[%s390_s1] sm:$0xff]  ;;  %v15_v20 = vld [vmem:[%s392_s0 + $0x8] sm:$0xff]  ;;  %v16_v24 = vld [vmem:[%s392_s0 + $0x10] sm:$0xff] }
   0x7   :  { %205 = vmatpush.msra.mxu2 %v43_v2  ;;  %206 = vmatpush.msra.mxu3 %v43_v2  ;;  %v14_v16 = vld [vmem:[%s392_s0] sm:$0xff]  ;;  %v19_v21 = vld [vmem:[%s392_s0 + $0x28] sm:$0xff]  ;;  %v20_v25 = vld [vmem:[%s392_s0 + $0x30] sm:$0xff] }
   0x8   :  { %53 = vmatpush.msra.mxu0 %v42_v3  ;;  %207 = vmatpush.msra.mxu1 %v42_v3  ;;  %v18_v17 = vld [vmem:[%s392_s0 + $0x20] sm:$0xff]  ;;  %v23_v22 = vld [vmem:[%s392_s0 + $0x48] sm:$0xff]  ;;  %v24_v26 = vld [vmem:[%s392_s0 + $0x50] sm:$0xff] }
   0x9   :  { %208 = vmatpush.msra.mxu2 %v42_v3  ;;  %209 = vmatpush.msra.mxu3 %v42_v3  ;;  %v22_v18 = vld [vmem:[%s392_s0 + $0x40] sm:$0xff]  ;;  %v27_v23 = vld [vmem:[%s392_s0 + $0x68] sm:$0xff]  ;;  %v28_v27 = vld [vmem:[%s392_s0 + $0x70] sm:$0xff] }
   0xa   :  { %54 = vmatpush.msra.mxu0 %v41_v4  ;;  %210 = vmatpush.msra.mxu1 %v41_v4  ;;  %v26_v19 = vld [vmem:[%s392_s0 + $0x60] sm:$0xff]  ;;  %v17_v28 = vld [vmem:[%s392_s0 + $0x18] sm:$0xff] }
   0xb   :  { %211 = vmatpush.msra.mxu2 %v41_v4  ;;  %212 = vmatpush.msra.mxu3 %v41_v4  ;;  %v21_v29 = vld [vmem:[%s392_s0 + $0x38] sm:$0xff]  ;;  %v246_v34 = vld [vmem:[%s391_s2] ss:$0 sm:$0xff] }
   0xc   :  { %55 = vmatpush.msra.mxu0 %v40_v5  ;;  %213 = vmatpush.msra.mxu1 %v40_v5  ;;  %v25_v30 = vld [vmem:[%s392_s0 + $0x58] sm:$0xff] }
   0xd   :  { %214 = vmatpush.msra.mxu2 %v40_v5  ;;  %215 = vmatpush.msra.mxu3 %v40_v5  ;;  %v29_v31 = vld [vmem:[%s392_s0 + $0x78] sm:$0xff] }
   0xe   :  { %56 = vmatpush.msra.mxu0 %v39_v6  ;;  %216 = vmatpush.msra.mxu1 %v39_v6 }
   0xf   :  { %217 = vmatpush.msra.mxu2 %v39_v6  ;;  %218 = vmatpush.msra.mxu3 %v39_v6 }
  0x10   :  { %57 = vmatpush.msra.mxu0 %v38_v7  ;;  %219 = vmatpush.msra.mxu1 %v38_v7 }
  0x11   :  { %220 = vmatpush.msra.mxu2 %v38_v7  ;;  %221 = vmatpush.msra.mxu3 %v38_v7 }
  0x12   :  { %58 = vmatpush.msra.mxu0 %v37_v8  ;;  %222 = vmatpush.msra.mxu1 %v37_v8 }
  0x13   :  { %223 = vmatpush.msra.mxu2 %v37_v8  ;;  %224 = vmatpush.msra.mxu3 %v37_v8 }
  0x14   :  { %59 = vmatpush.msra.mxu0 %v36_v9  ;;  %225 = vmatpush.msra.mxu1 %v36_v9 }
  0x15   :  { %226 = vmatpush.msra.mxu2 %v36_v9  ;;  %227 = vmatpush.msra.mxu3 %v36_v9 }
  0x16   :  { %60 = vmatpush.msra.mxu0 %v35_v10  ;;  %228 = vmatpush.msra.mxu1 %v35_v10 }
  0x17   :  { %229 = vmatpush.msra.mxu2 %v35_v10  ;;  %230 = vmatpush.msra.mxu3 %v35_v10 }
  0x18   :  { %61 = vmatpush.msra.mxu0 %v34_v11  ;;  %231 = vmatpush.msra.mxu1 %v34_v11 }
  0x19   :  { %232 = vmatpush.msra.mxu2 %v34_v11  ;;  %233 = vmatpush.msra.mxu3 %v34_v11 }
  0x1a   :  { %62 = vmatpush.msra.mxu0 %v33_v12  ;;  %234 = vmatpush.msra.mxu1 %v33_v12 }
  0x1b   :  { %235 = vmatpush.msra.mxu2 %v33_v12  ;;  %236 = vmatpush.msra.mxu3 %v33_v12 }
  0x1c   :  { %63 = vmatpush.msra.mxu0 %v32_v13  ;;  %237 = vmatpush.msra.mxu1 %v32_v13 }
  0x1d   :  { %238 = vmatpush.msra.mxu2 %v32_v13  ;;  %239 = vmatpush.msra.mxu3 %v32_v13 }
  0x1e   :  { %64 = vmatpush.msra.mxu0 %v31_v14  ;;  %240 = vmatpush.msra.mxu1 %v31_v14 }
  0x1f   :  { %241 = vmatpush.msra.mxu2 %v31_v14  ;;  %242 = vmatpush.msra.mxu3 %v31_v14 }
  0x20   :  { %65 = vmatpush.msra.mxu0 %v30_v15  ;;  %243 = vmatpush.msra.mxu1 %v30_v15 }
  0x21   :  { %244 = vmatpush.msra.mxu2 %v30_v15  ;;  %245 = vmatpush.msra.mxu3 %v30_v15 }
  0x22   :  { %66 = vmatmul.f32.vlgmr.msra.gmra.mxu0 %v14_v16  ;;  %78 = vmatmul.f32.vlgmr.msra.gmra.mxu1 %v18_v17 }
  0x23   :  { %90 = vmatmul.f32.vlgmr.msra.gmra.mxu2 %v22_v18  ;;  %102 = vmatmul.f32.vlgmr.msra.gmra.mxu3 %v26_v19 }
  0x2a   :  { %69 = vmatmul.f32.gmra.mxu0 %v15_v20  ;;  %81 = vmatmul.f32.gmra.mxu1 %v19_v21 }
  0x2b   :  { %93 = vmatmul.f32.gmra.mxu2 %v23_v22  ;;  %105 = vmatmul.f32.gmra.mxu3 %v27_v23 }
  0x32   :  { %72 = vmatmul.f32.gmra.mxu0 %v16_v24  ;;  %84 = vmatmul.f32.gmra.mxu1 %v20_v25 }
  0x33   :  { %96 = vmatmul.f32.gmra.mxu2 %v24_v26  ;;  %108 = vmatmul.f32.gmra.mxu3 %v28_v27 }
  0x3a   :  { %75 = vmatmul.f32.gmra.mxu0 %v17_v28  ;;  %87 = vmatmul.f32.gmra.mxu1 %v21_v29 }
  0x3b   :  { %99 = vmatmul.f32.gmra.mxu2 %v25_v30  ;;  %111 = vmatmul.f32.gmra.mxu3 %v29_v31 }
  0x9f   :  { %v67_v32 = vpop.f32.mrf.mxu0  ;;  %v79_v33 = vpop.f32.mrf.mxu1 }
  0xa0   :  { %v68_v39 = vadd.f32 %v246_v34, %v67_v32  ;;  %v80_v40 = vadd.f32 %v246_v34, %v79_v33 }
  0xa6   :  { %v91_v35 = vpop.f32.mrf.mxu2  ;;  %v103_v36 = vpop.f32.mrf.mxu3 }
  0xa7   :  { %v70_v37 = vpop.f32.mrf.mxu0  ;;  %v82_v38 = vpop.f32.mrf.mxu1  ;;  %v92_v47 = vadd.f32 %v246_v34, %v91_v35  ;;  %v104_v48 = vadd.f32 %v246_v34, %v103_v36 }
  0xa8   :  { %v71_v41 = vadd.f32 %v246_v34, %v70_v37  ;;  %v83_v42 = vadd.f32 %v246_v34, %v82_v38 }
  0xaa   :  { %v154_v43 = vpack.c.bf16 %v71_v41, %v68_v39  ;;  %v164_v44 = vpack.c.bf16 %v83_v42, %v80_v40 }
  0xac   :  { %155 = vst [vmem:[%s393_s3] sm:$0xff] %v154_v43  }
  0xad   :  { %192 = vst [vmem:[%s393_s3 + $0x10] sm:$0xff] %v164_v44  }
  0xae   :  { %v94_v45 = vpop.f32.mrf.mxu2  ;;  %v106_v46 = vpop.f32.mrf.mxu3 }
  0xaf   :  { %v95_v49 = vadd.f32 %v246_v34, %v94_v45  ;;  %v107_v50 = vadd.f32 %v246_v34, %v106_v46  ;;  %v73_v51 = vpop.f32.mrf.mxu0  ;;  %v85_v52 = vpop.f32.mrf.mxu1 }
  0xb0   :  { %v74_v59 = vadd.f32 %v246_v34, %v73_v51  ;;  %v86_v60 = vadd.f32 %v246_v34, %v85_v52 }
  0xb1   :  { %v174_v53 = vpack.c.bf16 %v95_v49, %v92_v47  ;;  %v184_v54 = vpack.c.bf16 %v107_v50, %v104_v48 }
  0xb3   :  { %194 = vst [vmem:[%s393_s3 + $0x20] sm:$0xff] %v174_v53  }
  0xb4   :  { %196 = vst [vmem:[%s393_s3 + $0x30] sm:$0xff] %v184_v54  }
  0xb6   :  { %v97_v55 = vpop.f32.mrf.mxu2  ;;  %v109_v56 = vpop.f32.mrf.mxu3 }
  0xb7   :  { %v76_v57 = vpop.f32.mrf.mxu0  ;;  %v88_v58 = vpop.f32.mrf.mxu1  ;;  %v98_v3 = vadd.f32 %v246_v34, %v97_v55  ;;  %v110_v4 = vadd.f32 %v246_v34, %v109_v56 }
  0xb8   :  { %v77_v61 = vadd.f32 %v246_v34, %v76_v57  ;;  %v89_v62 = vadd.f32 %v246_v34, %v88_v58 }
  0xba   :  { %v159_v63 = vpack.c.bf16 %v77_v61, %v74_v59  ;;  %v169_v0 = vpack.c.bf16 %v89_v62, %v86_v60 }
  0xbc   :  { %191 = vst [vmem:[%s393_s3 + $0x8] sm:$0xff] %v159_v63  }
  0xbd   :  { %193 = vst [vmem:[%s393_s3 + $0x18] sm:$0xff] %v169_v0  }
  0xbe   :  { %v100_v1 = vpop.f32.mrf.mxu2  ;;  %v112_v2 = vpop.f32.mrf.mxu3 }
  0xbf   :  { %v101_v5 = vadd.f32 %v246_v34, %v100_v1  ;;  %v113_v6 = vadd.f32 %v246_v34, %v112_v2 }
  0xc1   :  { %v179_v7 = vpack.c.bf16 %v101_v5, %v98_v3  ;;  %v189_v8 = vpack.c.bf16 %v113_v6, %v110_v4 }
  0xc3   :  { %195 = vst [vmem:[%s393_s3 + $0x28] sm:$0xff] %v179_v7  }
  0xc4   :  { %197 = vst [vmem:[%s393_s3 + $0x38] sm:$0xff] %v189_v8  }

// kernel: graphsage_forward.6
= control target key start
LH: loop header
LB: loop body
LE: loop exit
PB: predicated region body
PF: predicated region fallthrough
CT: control target
= control target key end

     0   :  { %s446_s1 = inlined_call_operand.vmem [shape: f32[128,128], index: 1, kind: input, shape index: {}]   ;;  %s447_s2 = inlined_call_operand.vmem [shape: f32[1,128], index: 2, kind: input, shape index: {}]   ;;  %s448_s0 = inlined_call_operand.vmem [shape: bf16[128,128], index: 0, kind: input, shape index: {}]   ;;  %s449_s3 = inlined_call_operand.vmem [shape: bf16[128,128], index: 3, kind: output, shape index: {}]  }
   0x1   :  { %v45_v0 = vld [vmem:[%s446_s1 + $0x78] sm:$0xff]  ;;  %v44_v1 = vld [vmem:[%s446_s1 + $0x70] sm:$0xff]  ;;  %v43_v2 = vld [vmem:[%s446_s1 + $0x68] sm:$0xff] }
   0x2   :  { %98 = vmatpush.msra.mxu0 %v45_v0  ;;  %278 = vmatpush.msra.mxu1 %v45_v0  ;;  %v42_v3 = vld [vmem:[%s446_s1 + $0x60] sm:$0xff]  ;;  %v41_v4 = vld [vmem:[%s446_s1 + $0x58] sm:$0xff]  ;;  %v40_v5 = vld [vmem:[%s446_s1 + $0x50] sm:$0xff] }
   0x3   :  { %279 = vmatpush.msra.mxu2 %v45_v0  ;;  %280 = vmatpush.msra.mxu3 %v45_v0  ;;  %v39_v6 = vld [vmem:[%s446_s1 + $0x48] sm:$0xff]  ;;  %v38_v7 = vld [vmem:[%s446_s1 + $0x40] sm:$0xff]  ;;  %v37_v8 = vld [vmem:[%s446_s1 + $0x38] sm:$0xff] }
   0x4   :  { %99 = vmatpush.msra.mxu0 %v44_v1  ;;  %281 = vmatpush.msra.mxu1 %v44_v1  ;;  %v36_v9 = vld [vmem:[%s446_s1 + $0x30] sm:$0xff]  ;;  %v35_v10 = vld [vmem:[%s446_s1 + $0x28] sm:$0xff]  ;;  %v34_v11 = vld [vmem:[%s446_s1 + $0x20] sm:$0xff] }
   0x5   :  { %282 = vmatpush.msra.mxu2 %v44_v1  ;;  %283 = vmatpush.msra.mxu3 %v44_v1  ;;  %v33_v12 = vld [vmem:[%s446_s1 + $0x18] sm:$0xff]  ;;  %v32_v13 = vld [vmem:[%s446_s1 + $0x10] sm:$0xff]  ;;  %v31_v14 = vld [vmem:[%s446_s1 + $0x8] sm:$0xff] }
   0x6   :  { %100 = vmatpush.msra.mxu0 %v43_v2  ;;  %284 = vmatpush.msra.mxu1 %v43_v2  ;;  %v30_v15 = vld [vmem:[%s446_s1] sm:$0xff]  ;;  %v225_v17 = vld [vmem:[%s448_s0 + $0x10] sm:$0xff]  ;;  %v224_v20 = vld [vmem:[%s448_s0 + $0x8] sm:$0xff] }
   0x7   :  { %285 = vmatpush.msra.mxu2 %v43_v2  ;;  %286 = vmatpush.msra.mxu3 %v43_v2  ;;  %v223_v16 = vld [vmem:[%s448_s0] sm:$0xff]  ;;  %v229_v19 = vld [vmem:[%s448_s0 + $0x30] sm:$0xff]  ;;  %v226_v21 = vld [vmem:[%s448_s0 + $0x18] sm:$0xff] }
   0x8   :  { %101 = vmatpush.msra.mxu0 %v42_v3  ;;  %287 = vmatpush.msra.mxu1 %v42_v3  ;;  %v227_v18 = vld [vmem:[%s448_s0 + $0x20] sm:$0xff]  ;;  %v228_v22 = vld [vmem:[%s448_s0 + $0x28] sm:$0xff]  ;;  %v230_v23 = vld [vmem:[%s448_s0 + $0x38] sm:$0xff] }
   0x9   :  { %288 = vmatpush.msra.mxu2 %v42_v3  ;;  %289 = vmatpush.msra.mxu3 %v42_v3  ;;  %v326_v26 = vld [vmem:[%s447_s2] ss:$0 sm:$0xff] }
   0xa   :  { %102 = vmatpush.msra.mxu0 %v41_v4  ;;  %290 = vmatpush.msra.mxu1 %v41_v4 }
   0xb   :  { %291 = vmatpush.msra.mxu2 %v41_v4  ;;  %292 = vmatpush.msra.mxu3 %v41_v4 }
   0xc   :  { %103 = vmatpush.msra.mxu0 %v40_v5  ;;  %293 = vmatpush.msra.mxu1 %v40_v5 }
   0xd   :  { %294 = vmatpush.msra.mxu2 %v40_v5  ;;  %295 = vmatpush.msra.mxu3 %v40_v5 }
   0xe   :  { %104 = vmatpush.msra.mxu0 %v39_v6  ;;  %296 = vmatpush.msra.mxu1 %v39_v6 }
   0xf   :  { %297 = vmatpush.msra.mxu2 %v39_v6  ;;  %298 = vmatpush.msra.mxu3 %v39_v6 }
  0x10   :  { %105 = vmatpush.msra.mxu0 %v38_v7  ;;  %299 = vmatpush.msra.mxu1 %v38_v7 }
  0x11   :  { %300 = vmatpush.msra.mxu2 %v38_v7  ;;  %301 = vmatpush.msra.mxu3 %v38_v7 }
  0x12   :  { %106 = vmatpush.msra.mxu0 %v37_v8  ;;  %302 = vmatpush.msra.mxu1 %v37_v8 }
  0x13   :  { %303 = vmatpush.msra.mxu2 %v37_v8  ;;  %304 = vmatpush.msra.mxu3 %v37_v8 }
  0x14   :  { %107 = vmatpush.msra.mxu0 %v36_v9  ;;  %305 = vmatpush.msra.mxu1 %v36_v9 }
  0x15   :  { %306 = vmatpush.msra.mxu2 %v36_v9  ;;  %307 = vmatpush.msra.mxu3 %v36_v9 }
  0x16   :  { %108 = vmatpush.msra.mxu0 %v35_v10  ;;  %308 = vmatpush.msra.mxu1 %v35_v10 }
  0x17   :  { %309 = vmatpush.msra.mxu2 %v35_v10  ;;  %310 = vmatpush.msra.mxu3 %v35_v10 }
  0x18   :  { %109 = vmatpush.msra.mxu0 %v34_v11  ;;  %311 = vmatpush.msra.mxu1 %v34_v11 }
  0x19   :  { %312 = vmatpush.msra.mxu2 %v34_v11  ;;  %313 = vmatpush.msra.mxu3 %v34_v11 }
  0x1a   :  { %110 = vmatpush.msra.mxu0 %v33_v12  ;;  %314 = vmatpush.msra.mxu1 %v33_v12 }
  0x1b   :  { %315 = vmatpush.msra.mxu2 %v33_v12  ;;  %316 = vmatpush.msra.mxu3 %v33_v12 }
  0x1c   :  { %111 = vmatpush.msra.mxu0 %v32_v13  ;;  %317 = vmatpush.msra.mxu1 %v32_v13 }
  0x1d   :  { %318 = vmatpush.msra.mxu2 %v32_v13  ;;  %319 = vmatpush.msra.mxu3 %v32_v13 }
  0x1e   :  { %112 = vmatpush.msra.mxu0 %v31_v14  ;;  %320 = vmatpush.msra.mxu1 %v31_v14 }
  0x1f   :  { %321 = vmatpush.msra.mxu2 %v31_v14  ;;  %322 = vmatpush.msra.mxu3 %v31_v14 }
  0x20   :  { %113 = vmatpush.msra.mxu0 %v30_v15  ;;  %323 = vmatpush.msra.mxu1 %v30_v15 }
  0x21   :  { %324 = vmatpush.msra.mxu2 %v30_v15  ;;  %325 = vmatpush.msra.mxu3 %v30_v15 }
  0x22   :  { %114 = vmatmul.bf16.vlgmr.msra.gmra.mxu0 %v223_v16  ;;  %124 = vmatmul.bf16.vlgmr.msra.gmra.mxu1 %v225_v17 }
  0x23   :  { %134 = vmatmul.bf16.vlgmr.msra.gmra.mxu2 %v227_v18  ;;  %144 = vmatmul.bf16.vlgmr.msra.gmra.mxu3 %v229_v19 }
  0x32   :  { %119 = vmatmul.bf16.gmra.mxu0 %v224_v20  ;;  %129 = vmatmul.bf16.gmra.mxu1 %v226_v21 }
  0x33   :  { %139 = vmatmul.bf16.gmra.mxu2 %v228_v22  ;;  %149 = vmatmul.bf16.gmra.mxu3 %v230_v23 }
  0x9f   :  { %v115_v24 = vpop.f32.mrf.mxu0  ;;  %v125_v25 = vpop.f32.mrf.mxu1 }
  0xa0   :  { %v116_v31 = vadd.f32 %v326_v26, %v115_v24  ;;  %v126_v32 = vadd.f32 %v326_v26, %v125_v25 }
  0xa6   :  { %v135_v27 = vpop.f32.mrf.mxu2  ;;  %v145_v28 = vpop.f32.mrf.mxu3 }
  0xa7   :  { %v117_v29 = vpop.f32.mrf.mxu0  ;;  %v127_v30 = vpop.f32.mrf.mxu1  ;;  %v136_v39 = vadd.f32 %v326_v26, %v135_v27  ;;  %v146_v40 = vadd.f32 %v326_v26, %v145_v28 }
  0xa8   :  { %v118_v33 = vadd.f32 %v326_v26, %v117_v29  ;;  %v128_v34 = vadd.f32 %v326_v26, %v127_v30 }
  0xaa   :  { %v234_v35 = vpack.c.bf16 %v118_v33, %v116_v31  ;;  %v244_v36 = vpack.c.bf16 %v128_v34, %v126_v32 }
  0xac   :  { %235 = vst [vmem:[%s449_s3] sm:$0xff] %v234_v35  }
  0xad   :  { %272 = vst [vmem:[%s449_s3 + $0x10] sm:$0xff] %v244_v36  }
  0xae   :  { %v137_v37 = vpop.f32.mrf.mxu2  ;;  %v147_v38 = vpop.f32.mrf.mxu3 }
  0xaf   :  { %v138_v41 = vadd.f32 %v326_v26, %v137_v37  ;;  %v148_v42 = vadd.f32 %v326_v26, %v147_v38  ;;  %v120_v43 = vpop.f32.mrf.mxu0  ;;  %v130_v44 = vpop.f32.mrf.mxu1 }
  0xb0   :  { %v121_v51 = vadd.f32 %v326_v26, %v120_v43  ;;  %v131_v52 = vadd.f32 %v326_v26, %v130_v44 }
  0xb1   :  { %v254_v45 = vpack.c.bf16 %v138_v41, %v136_v39  ;;  %v264_v46 = vpack.c.bf16 %v148_v42, %v146_v40 }
  0xb3   :  { %274 = vst [vmem:[%s449_s3 + $0x20] sm:$0xff] %v254_v45  }
  0xb4   :  { %276 = vst [vmem:[%s449_s3 + $0x30] sm:$0xff] %v264_v46  }
  0xb6   :  { %v140_v47 = vpop.f32.mrf.mxu2  ;;  %v150_v48 = vpop.f32.mrf.mxu3 }
  0xb7   :  { %v122_v49 = vpop.f32.mrf.mxu0  ;;  %v132_v50 = vpop.f32.mrf.mxu1  ;;  %v141_v59 = vadd.f32 %v326_v26, %v140_v47  ;;  %v151_v60 = vadd.f32 %v326_v26, %v150_v48 }
  0xb8   :  { %v123_v53 = vadd.f32 %v326_v26, %v122_v49  ;;  %v133_v54 = vadd.f32 %v326_v26, %v132_v50 }
  0xba   :  { %v239_v55 = vpack.c.bf16 %v123_v53, %v121_v51  ;;  %v249_v56 = vpack.c.bf16 %v133_v54, %v131_v52 }
  0xbc   :  { %271 = vst [vmem:[%s449_s3 + $0x8] sm:$0xff] %v239_v55  }
  0xbd   :  { %273 = vst [vmem:[%s449_s3 + $0x18] sm:$0xff] %v249_v56  }
  0xbe   :  { %v142_v57 = vpop.f32.mrf.mxu2  ;;  %v152_v58 = vpop.f32.mrf.mxu3 }
  0xbf   :  { %v143_v61 = vadd.f32 %v326_v26, %v142_v57  ;;  %v153_v62 = vadd.f32 %v326_v26, %v152_v58 }
  0xc1   :  { %v259_v63 = vpack.c.bf16 %v143_v61, %v141_v59  ;;  %v269_v0 = vpack.c.bf16 %v153_v62, %v151_v60 }
  0xc3   :  { %275 = vst [vmem:[%s449_s3 + $0x28] sm:$0xff] %v259_v63  }
  0xc4   :  { %277 = vst [vmem:[%s449_s3 + $0x38] sm:$0xff] %v269_v0  }

// kernel: graphsage_forward.5
= control target key start
LH: loop header
LB: loop body
LE: loop exit
PB: predicated region body
PF: predicated region fallthrough
CT: control target
= control target key end

     0   :  { %v700_v51 = vmov 0   ;;  %vm220_vm0 = vcmask 7168   ;;  %s828_s0 = inlined_call_operand.vmem [shape: s8[128,128], index: 0, kind: input, shape index: {}]   ;;  %s829_s1 = inlined_call_operand.vmem [shape: bf16[128,128], index: 1, kind: input, shape index: {}]   ;;  %s830_s2 = inlined_call_operand.vmem [shape: bf16[128,128], index: 2, kind: output, shape index: {}]  }
   0x1   :  { %v11_v0 = vld [vmem:[%s828_s0] sm:$0xff]  ;;  %v12_v1 = vld [vmem:[%s828_s0 + $0x8] sm:$0xff]  ;;  %v13_v14 = vld [vmem:[%s828_s0 + $0x10] sm:$0xff]  ;;  %667 = vset.pattern.permute.xlu0 %v700_v51  ;;  %665 = vset.pattern.permute.xlu1 %v700_v51 }
   0x2   :  { %v17_v2 = vunpack.c.2.s8 %v11_v0  ;;  %v15_v3 = vunpack.c.0.s8 %v11_v0  ;;  %v19_v4 = vunpack.c.0.s8 %v12_v1  ;;  %v16_v8 = vunpack.c.1.s8 %v11_v0  ;;  %v592_v17 = vld [vmem:[%s829_s1 + $0x38] sm:$0xff]  ;;  %v591_v19 = vld [vmem:[%s829_s1 + $0x30] sm:$0xff]  ;;  %v590_v23 = vld [vmem:[%s829_s1 + $0x28] sm:$0xff]  ;;  %666 = vset.pattern.permute.xlu2 %v700_v51 }
   0x3   :  { %v18_v9 = vunpack.c.3.s8 %v11_v0  ;;  %v20_v10 = vunpack.c.1.s8 %v12_v1  ;;  %v21_v15 = vunpack.c.2.s8 %v12_v1  ;;  %v22_v16 = vunpack.c.3.s8 %v12_v1  ;;  %119 = vmatpush.bf16.msra.mxu0 %v592_v17  ;;  %640 = vmatpush.bf16.msra.mxu1 %v592_v17  ;;  %v589_v27 = vld [vmem:[%s829_s1 + $0x20] sm:$0xff]  ;;  %v14_v31 = vld [vmem:[%s828_s0 + $0x18] sm:$0xff]  ;;  %v587_v36 = vld [vmem:[%s829_s1 + $0x10] sm:$0xff] }
   0x4   :  { %v722_v5 = vcvt.s32.f32 %v17_v2  ;;  %v724_v6 = vcvt.s32.f32 %v15_v3  ;;  %v726_v7 = vcvt.s32.f32 %v19_v4  ;;  %v731_v11 = vcvt.s32.f32 %v16_v8  ;;  %641 = vmatpush.bf16.msra.mxu2 %v592_v17  ;;  %642 = vmatpush.bf16.msra.mxu3 %v592_v17  ;;  %v588_v32 = vld [vmem:[%s829_s1 + $0x18] sm:$0xff]  ;;  %v586_v40 = vld [vmem:[%s829_s1 + $0x8] sm:$0xff]  ;;  %v585_v42 = vld [vmem:[%s829_s1] sm:$0xff] }
   0x5   :  { %v733_v12 = vcvt.s32.f32 %v18_v9  ;;  %v735_v13 = vcvt.s32.f32 %v20_v10  ;;  %v23_v18 = vunpack.c.0.s8 %v13_v14  ;;  %v749_v20 = vcvt.s32.f32 %v21_v15 }
   0x6   :  { %172 = vadd.xlane.f32.xlu1 %v722_v5  ;;  %168 = vadd.xlane.f32.xlu0 %v724_v6  ;;  %v751_v21 = vcvt.s32.f32 %v22_v16  ;;  %v24_v24 = vunpack.c.1.s8 %v13_v14  ;;  %v25_v25 = vunpack.c.2.s8 %v13_v14  ;;  %v26_v26 = vunpack.c.3.s8 %v13_v14 }
   0x7   :  { %176 = vadd.xlane.f32.xlu2 %v726_v7  ;;  %v753_v22 = vcvt.s32.f32 %v23_v18  ;;  %120 = vmatpush.bf16.msra.mxu0 %v591_v19  ;;  %v27_v33 = vunpack.c.0.s8 %v14_v31  ;;  %v28_v34 = vunpack.c.1.s8 %v14_v31  ;;  %v29_v35 = vunpack.c.2.s8 %v14_v31 }
   0x8   :  { %643 = vmatpush.bf16.msra.mxu1 %v591_v19  ;;  %644 = vmatpush.bf16.msra.mxu2 %v591_v19  ;;  %v40_v28 = vcvt.s32.f32 %v24_v24  ;;  %v41_v29 = vcvt.s32.f32 %v25_v25  ;;  %v42_v30 = vcvt.s32.f32 %v26_v26  ;;  %v30_v41 = vunpack.c.3.s8 %v14_v31 }
   0x9   :  { %645 = vmatpush.bf16.msra.mxu3 %v591_v19  ;;  %v43_v37 = vcvt.s32.f32 %v27_v33  ;;  %v44_v38 = vcvt.s32.f32 %v28_v34  ;;  %v45_v39 = vcvt.s32.f32 %v29_v35  ;;  %v47_v44 = vpack.c.bf16 %v731_v11, %v724_v6 }
   0xa   :  { %v46_v43 = vcvt.s32.f32 %v30_v41  ;;  %v49_v45 = vpack.c.bf16 %v735_v13, %v726_v7  ;;  %v48_v46 = vpack.c.bf16 %v733_v12, %v722_v5  ;;  %v51_v47 = vpack.c.bf16 %v40_v28, %v753_v22 }
   0xb   :  { %121 = vmatpush.bf16.msra.mxu0 %v590_v23  ;;  %v50_v48 = vpack.c.bf16 %v751_v21, %v749_v20  ;;  %v53_v49 = vpack.c.bf16 %v44_v38, %v43_v37  ;;  %v52_v50 = vpack.c.bf16 %v42_v30, %v41_v29 }
   0xc   :  { %646 = vmatpush.bf16.msra.mxu1 %v590_v23  ;;  %647 = vmatpush.bf16.msra.mxu2 %v590_v23  ;;  %v54_v52 = vpack.c.bf16 %v46_v43, %v45_v39 }
   0xd   :  { %648 = vmatpush.bf16.msra.mxu3 %v590_v23 }
   0xe   :  { %170 = vadd.xlane.f32.xlu0 %v731_v11  ;;  %174 = vadd.xlane.f32.xlu1 %v733_v12 }
   0xf   :  { %178 = vadd.xlane.f32.xlu2 %v735_v13  ;;  %122 = vmatpush.bf16.msra.mxu0 %v589_v27 }
  0x10   :  { %649 = vmatpush.bf16.msra.mxu1 %v589_v27  ;;  %650 = vmatpush.bf16.msra.mxu2 %v589_v27 }
  0x11   :  { %651 = vmatpush.bf16.msra.mxu3 %v589_v27 }
  0x13   :  { %123 = vmatpush.bf16.msra.mxu0 %v588_v32 }
  0x14   :  { %652 = vmatpush.bf16.msra.mxu1 %v588_v32  ;;  %653 = vmatpush.bf16.msra.mxu2 %v588_v32 }
  0x15   :  { %654 = vmatpush.bf16.msra.mxu3 %v588_v32 }
  0x16   :  { %180 = vadd.xlane.f32.xlu0 %v749_v20  ;;  %182 = vadd.xlane.f32.xlu1 %v751_v21 }
  0x17   :  { %184 = vadd.xlane.f32.xlu2 %v753_v22  ;;  %124 = vmatpush.bf16.msra.mxu0 %v587_v36 }
  0x18   :  { %655 = vmatpush.bf16.msra.mxu1 %v587_v36  ;;  %656 = vmatpush.bf16.msra.mxu2 %v587_v36 }
  0x19   :  { %657 = vmatpush.bf16.msra.mxu3 %v587_v36 }
  0x1b   :  { %125 = vmatpush.bf16.msra.mxu0 %v586_v40 }
  0x1c   :  { %658 = vmatpush.bf16.msra.mxu1 %v586_v40  ;;  %659 = vmatpush.bf16.msra.mxu2 %v586_v40 }
  0x1d   :  { %660 = vmatpush.bf16.msra.mxu3 %v586_v40 }
  0x1e   :  { %186 = vadd.xlane.f32.xlu0 %v40_v28  ;;  %188 = vadd.xlane.f32.xlu1 %v41_v29 }
  0x1f   :  { %190 = vadd.xlane.f32.xlu2 %v42_v30  ;;  %126 = vmatpush.bf16.msra.mxu0 %v585_v42 }
  0x20   :  { %661 = vmatpush.bf16.msra.mxu1 %v585_v42  ;;  %662 = vmatpush.bf16.msra.mxu2 %v585_v42 }
  0x21   :  { %663 = vmatpush.bf16.msra.mxu3 %v585_v42 }
  0x22   :  { %127 = vmatmul.bf16.vlgmr.msra.gmra.mxu0 %v47_v44 }
  0x23   :  { %137 = vmatmul.bf16.vlgmr.msra.gmra.mxu1 %v49_v45  ;;  %147 = vmatmul.bf16.vlgmr.msra.gmra.mxu2 %v51_v47 }
  0x24   :  { %157 = vmatmul.bf16.vlgmr.msra.gmra.mxu3 %v53_v49 }
  0x26   :  { %192 = vadd.xlane.f32.xlu0 %v43_v37  ;;  %194 = vadd.xlane.f32.xlu1 %v44_v38 }
  0x27   :  { %196 = vadd.xlane.f32.xlu2 %v45_v39 }
  0x2e   :  { %198 = vadd.xlane.f32.xlu0 %v46_v43 }
  0x32   :  { %132 = vmatmul.bf16.gmra.mxu0 %v48_v46 }
  0x33   :  { %142 = vmatmul.bf16.gmra.mxu1 %v50_v48  ;;  %152 = vmatmul.bf16.gmra.mxu2 %v52_v50 }
  0x34   :  { %162 = vmatmul.bf16.gmra.mxu3 %v54_v52 }
  0x79   :  { %v173_v53 = vpop.xlane.xlu1 %172  ;;  %v169_v54 = vpop.xlane.xlu0 %168 }
  0x7a   :  { %223 = vst.msk [vmem:[#allocation3 + $0x10] sm:$0xff] %vm220_vm0, %v173_v53  ;;  %v177_v55 = vpop.xlane.xlu2 %176 }
  0x7b   :  { %221 = vst.msk [vmem:[#allocation3] sm:$0xff] %vm220_vm0, %v169_v54 }
  0x7c   :  { %225 = vst.msk [vmem:[#allocation3 + $0x20] sm:$0xff] %vm220_vm0, %v177_v55 }
  0x81   :  { %v171_v56 = vpop.xlane.xlu0 %170  ;;  %v175_v57 = vpop.xlane.xlu1 %174  ;;  %v343_v58 = vld [vmem:[#allocation3 + $0x10] sm:$0xff] }
  0x82   :  { %222 = vst.msk [vmem:[#allocation3 + $0x8] sm:$0xff] %vm220_vm0, %v171_v56  ;;  %v179_v59 = vpop.xlane.xlu2 %178  ;;  %v359_v60 = vadd.f32 1e-06, %v343_v58  ;;  %v341_v61 = vld [vmem:[#allocation3] sm:$0xff] }
  0x83   :  { %226 = vst.msk [vmem:[#allocation3 + $0x28] sm:$0xff] %vm220_vm0, %v179_v59  ;;  %v357_v62 = vadd.f32 1e-06, %v341_v61  ;;  %v345_v63 = vld [vmem:[#allocation3 + $0x20] sm:$0xff] }
  0x84   :  { %224 = vst.msk [vmem:[#allocation3 + $0x18] sm:$0xff] %vm220_vm0, %v175_v57  ;;  %668 = vrcp.f32 %v359_v60  ;;  %v361_v0 = vadd.f32 1e-06, %v345_v63 }
  0x85   :  { %670 = vrcp.f32 %v357_v62 }
  0x86   :  { %672 = vrcp.f32 %v361_v0 }
  0x89   :  { %v181_v1 = vpop.xlane.xlu0 %180  ;;  %v342_v2 = vld [vmem:[#allocation3 + $0x8] sm:$0xff]  ;;  %v183_v3 = vpop.xlane.xlu1 %182 }
  0x8a   :  { %v669_v4 = vpop.eup %668  ;;  %227 = vst.msk [vmem:[#allocation3 + $0x30] sm:$0xff] %vm220_vm0, %v181_v1  ;;  %v185_v5 = vpop.xlane.xlu2 %184  ;;  %v358_v6 = vadd.f32 1e-06, %v342_v2  ;;  %v346_v17 = vld [vmem:[#allocation3 + $0x28] sm:$0xff] }
  0x8b   :  { %v671_v7 = vpop.eup %670  ;;  %417 = vperm.xlu0 %667, %v669_v4   ;;  %229 = vst.msk [vmem:[#allocation3 + $0x40] sm:$0xff] %vm220_vm0, %v185_v5  ;;  %v344_v8 = vld [vmem:[#allocation3 + $0x18] sm:$0xff]  ;;  %v362_v19 = vadd.f32 1e-06, %v346_v17 }
  0x8c   :  { %407 = vperm.xlu1 %665, %v671_v7   ;;  %674 = vrcp.f32 %v358_v6  ;;  %228 = vst.msk [vmem:[#allocation3 + $0x38] sm:$0xff] %vm220_vm0, %v183_v3  ;;  %v360_v9 = vadd.f32 1e-06, %v344_v8  ;;  %v673_v10 = vpop.eup %672 }
  0x8e   :  { %676 = vrcp.f32 %v360_v9 }
  0x91   :  { %v187_v11 = vpop.xlane.xlu0 %186  ;;  %v347_v12 = vld [vmem:[#allocation3 + $0x30] sm:$0xff]  ;;  %v189_v13 = vpop.xlane.xlu1 %188 }
  0x92   :  { %v675_v14 = vpop.eup %674  ;;  %230 = vst.msk [vmem:[#allocation3 + $0x48] sm:$0xff] %vm220_vm0, %v187_v11  ;;  %v191_v15 = vpop.xlane.xlu2 %190  ;;  %v363_v16 = vadd.f32 1e-06, %v347_v12  ;;  %v349_v18 = vld [vmem:[#allocation3 + $0x40] sm:$0xff] }
  0x93   :  { %412 = vperm.xlu2 %666, %v675_v14   ;;  %232 = vst.msk [vmem:[#allocation3 + $0x58] sm:$0xff] %vm220_vm0, %v191_v15  ;;  %v365_v20 = vadd.f32 1e-06, %v349_v18  ;;  %v348_v28 = vld [vmem:[#allocation3 + $0x38] sm:$0xff] }
  0x94   :  { %427 = vperm.xlu1 %665, %v673_v10   ;;  %678 = vrcp.f32 %v363_v16  ;;  %231 = vst.msk [vmem:[#allocation3 + $0x50] sm:$0xff] %vm220_vm0, %v189_v13  ;;  %v677_v21 = vpop.eup %676  ;;  %v364_v30 = vadd.f32 1e-06, %v348_v28 }
  0x95   :  { %680 = vrcp.f32 %v362_v19 }
  0x96   :  { %682 = vrcp.f32 %v365_v20 }
  0x99   :  { %v193_v22 = vpop.xlane.xlu0 %192  ;;  %v350_v23 = vld [vmem:[#allocation3 + $0x48] sm:$0xff]  ;;  %v195_v24 = vpop.xlane.xlu1 %194 }
  0x9a   :  { %v679_v25 = vpop.eup %678  ;;  %233 = vst.msk [vmem:[#allocation3 + $0x60] sm:$0xff] %vm220_vm0, %v193_v22  ;;  %v197_v26 = vpop.xlane.xlu2 %196  ;;  %v366_v27 = vadd.f32 1e-06, %v350_v23  ;;  %v352_v29 = vld [vmem:[#allocation3 + $0x58] sm:$0xff] }
  0x9b   :  { %422 = vperm.xlu2 %666, %v677_v21   ;;  %235 = vst.msk [vmem:[#allocation3 + $0x70] sm:$0xff] %vm220_vm0, %v197_v26  ;;  %v368_v31 = vadd.f32 1e-06, %v352_v29  ;;  %v681_v32 = vpop.eup %680  ;;  %v351_v38 = vld [vmem:[#allocation3 + $0x50] sm:$0xff] }
  0x9c   :  { %437 = vperm.xlu1 %665, %v679_v25   ;;  %684 = vrcp.f32 %v366_v27  ;;  %234 = vst.msk [vmem:[#allocation3 + $0x68] sm:$0xff] %vm220_vm0, %v195_v24  ;;  %v683_v33 = vpop.eup %682  ;;  %v367_v40 = vadd.f32 1e-06, %v351_v38 }
  0x9d   :  { %686 = vrcp.f32 %v364_v30 }
  0x9e   :  { %688 = vrcp.f32 %v368_v31 }
  0x9f   :  { %v128_v53 = vpop.f32.mrf.mxu0 }
  0xa0   :  { %v138_v55 = vpop.f32.mrf.mxu1 }
  0xa1   :  { %v199_v34 = vpop.xlane.xlu0 %198  ;;  %v353_v35 = vld [vmem:[#allocation3 + $0x60] sm:$0xff] }
  0xa2   :  { %v685_v36 = vpop.eup %684  ;;  %236 = vst.msk [vmem:[#allocation3 + $0x78] sm:$0xff] %vm220_vm0, %v199_v34  ;;  %v369_v37 = vadd.f32 1e-06, %v353_v35  ;;  %v355_v39 = vld [vmem:[#allocation3 + $0x70] sm:$0xff] }
  0xa3   :  { %432 = vperm.xlu2 %666, %v681_v32   ;;  %452 = vperm.xlu0 %667, %v685_v36   ;;  %v371_v41 = vadd.f32 1e-06, %v355_v39  ;;  %v687_v42 = vpop.eup %686  ;;  %v354_v47 = vld [vmem:[#allocation3 + $0x68] sm:$0xff] }
  0xa4   :  { %447 = vperm.xlu1 %665, %v683_v33   ;;  %690 = vrcp.f32 %v369_v37  ;;  %v689_v43 = vpop.eup %688  ;;  %v370_v48 = vadd.f32 1e-06, %v354_v47 }
  0xa5   :  { %692 = vrcp.f32 %v367_v40 }
  0xa6   :  { %694 = vrcp.f32 %v371_v41  ;;  %v148_v6 = vpop.f32.mrf.mxu2 }
  0xa7   :  { %v130_v54 = vpop.f32.mrf.mxu0  ;;  %v158_v15 = vpop.f32.mrf.mxu3 }
  0xa8   :  { %v140_v59 = vpop.f32.mrf.mxu1 }
  0xa9   :  { %v356_v44 = vld [vmem:[#allocation3 + $0x78] sm:$0xff] }
  0xaa   :  { %v691_v45 = vpop.eup %690  ;;  %v372_v46 = vadd.f32 1e-06, %v356_v44 }
  0xab   :  { %442 = vperm.xlu2 %666, %v687_v42   ;;  %467 = vperm.xlu0 %667, %v691_v45   ;;  %v693_v49 = vpop.eup %692 }
  0xac   :  { %462 = vperm.xlu1 %665, %v689_v43   ;;  %696 = vrcp.f32 %v372_v46  ;;  %v695_v50 = vpop.eup %694 }
  0xad   :  { %698 = vrcp.f32 %v370_v48 }
  0xae   :  { %v150_v20 = vpop.f32.mrf.mxu2 }
  0xaf   :  { %v133_v57 = vpop.f32.mrf.mxu0  ;;  %v160_v27 = vpop.f32.mrf.mxu3 }
  0xb0   :  { %v143_v5 = vpop.f32.mrf.mxu1 }
  0xb2   :  { %v697_v51 = vpop.eup %696 }
  0xb3   :  { %457 = vperm.xlu2 %666, %v693_v49   ;;  %482 = vperm.xlu0 %667, %v697_v51   ;;  %v699_v52 = vpop.eup %698 }
  0xb4   :  { %477 = vperm.xlu1 %665, %v695_v50  }
  0xb6   :  { %v153_v30 = vpop.f32.mrf.mxu2 }
  0xb7   :  { %v135_v60 = vpop.f32.mrf.mxu0  ;;  %v163_v38 = vpop.f32.mrf.mxu3 }
  0xb8   :  { %v145_v19 = vpop.f32.mrf.mxu1 }
  0xbb   :  { %472 = vperm.xlu2 %666, %v699_v52  }
  0xbe   :  { %v155_v41 = vpop.f32.mrf.mxu2 }
  0xed   :  { %v413_v56 = vpop.permute.xlu2 %412 }
  0xee   :  { %v486_v62 = vmul.f32 %v413_v56, %v130_v54 }
  0xf0   :  { %v502_v8 = vmax.f32 %v486_v62, 0.0 }
  0xf5   :  { %v423_v58 = vpop.permute.xlu2 %422 }
  0xf6   :  { %v488_v61 = vmul.f32 %v423_v58, %v135_v60 }
  0xf8   :  { %v504_v3 = vmax.f32 %v488_v61, 0.0 }
  0xfd   :  { %v433_v63 = vpop.permute.xlu2 %432  ;;  %v418_v0 = vpop.permute.xlu0 %417 }
  0xfe   :  { %v408_v1 = vpop.permute.xlu1 %407  ;;  %v487_v2 = vmul.f32 %v418_v0, %v133_v57  ;;  %v490_v12 = vmul.f32 %v433_v63, %v140_v59 }
  0xff   :  { %v485_v4 = vmul.f32 %v408_v1, %v128_v53  ;;  %v165_v53 = vpop.f32.mrf.mxu3 }
 0x100   :  { %v503_v7 = vmax.f32 %v487_v2, 0.0  ;;  %v506_v17 = vmax.f32 %v490_v12, 0.0 }
 0x101   :  { %v501_v9 = vmax.f32 %v485_v4, 0.0 }
 0x102   :  { %v601_v10 = vpack.c.bf16 %v504_v3, %v503_v7 }
 0x103   :  { %v596_v11 = vpack.c.bf16 %v502_v8, %v501_v9 }
 0x104   :  { %633 = vst [vmem:[%s830_s2 + $0x8] sm:$0xff] %v601_v10  }
 0x105   :  { %597 = vst [vmem:[%s830_s2] sm:$0xff] %v596_v11   ;;  %v443_v13 = vpop.permute.xlu2 %442 }
 0x106   :  { %v428_v14 = vpop.permute.xlu1 %427  ;;  %v492_v22 = vmul.f32 %v443_v13, %v145_v19 }
 0x107   :  { %v489_v16 = vmul.f32 %v428_v14, %v138_v55 }
 0x108   :  { %v508_v26 = vmax.f32 %v492_v22, 0.0 }
 0x109   :  { %v505_v18 = vmax.f32 %v489_v16, 0.0 }
 0x10b   :  { %v606_v21 = vpack.c.bf16 %v506_v17, %v505_v18 }
 0x10d   :  { %634 = vst [vmem:[%s830_s2 + $0x10] sm:$0xff] %v606_v21   ;;  %v458_v24 = vpop.permute.xlu2 %457 }
 0x10e   :  { %v438_v23 = vpop.permute.xlu1 %437  ;;  %v495_v42 = vmul.f32 %v458_v24, %v153_v30 }
 0x10f   :  { %v491_v25 = vmul.f32 %v438_v23, %v143_v5 }
 0x110   :  { %v511_v49 = vmax.f32 %v495_v42, 0.0 }
 0x111   :  { %v507_v28 = vmax.f32 %v491_v25, 0.0 }
 0x113   :  { %v611_v29 = vpack.c.bf16 %v508_v26, %v507_v28 }
 0x115   :  { %635 = vst [vmem:[%s830_s2 + $0x18] sm:$0xff] %v611_v29   ;;  %v453_v31 = vpop.permute.xlu0 %452  ;;  %v473_v36 = vpop.permute.xlu2 %472 }
 0x116   :  { %v448_v32 = vpop.permute.xlu1 %447  ;;  %v494_v33 = vmul.f32 %v453_v31, %v150_v20  ;;  %v498_v40 = vmul.f32 %v473_v36, %v160_v27 }
 0x117   :  { %v493_v34 = vmul.f32 %v448_v32, %v148_v6 }
 0x118   :  { %v510_v35 = vmax.f32 %v494_v33, 0.0  ;;  %v514_v47 = vmax.f32 %v498_v40, 0.0 }
 0x119   :  { %v509_v37 = vmax.f32 %v493_v34, 0.0 }
 0x11b   :  { %v616_v39 = vpack.c.bf16 %v510_v35, %v509_v37 }
 0x11d   :  { %636 = vst [vmem:[%s830_s2 + $0x20] sm:$0xff] %v616_v39   ;;  %v468_v43 = vpop.permute.xlu0 %467 }
 0x11e   :  { %v463_v44 = vpop.permute.xlu1 %462  ;;  %v497_v45 = vmul.f32 %v468_v43, %v158_v15 }
 0x11f   :  { %v496_v46 = vmul.f32 %v463_v44, %v155_v41 }
 0x120   :  { %v513_v48 = vmax.f32 %v497_v45, 0.0 }
 0x121   :  { %v512_v50 = vmax.f32 %v496_v46, 0.0 }
 0x122   :  { %v626_v51 = vpack.c.bf16 %v514_v47, %v513_v48 }
 0x123   :  { %v621_v52 = vpack.c.bf16 %v512_v50, %v511_v49 }
 0x124   :  { %638 = vst [vmem:[%s830_s2 + $0x30] sm:$0xff] %v626_v51  }
 0x125   :  { %637 = vst [vmem:[%s830_s2 + $0x28] sm:$0xff] %v621_v52   ;;  %v483_v54 = vpop.permute.xlu0 %482 }
 0x126   :  { %v478_v55 = vpop.permute.xlu1 %477  ;;  %v500_v56 = vmul.f32 %v483_v54, %v165_v53 }
 0x127   :  { %v499_v57 = vmul.f32 %v478_v55, %v163_v38 }
 0x128   :  { %v516_v58 = vmax.f32 %v500_v56, 0.0 }
 0x129   :  { %v515_v59 = vmax.f32 %v499_v57, 0.0 }
 0x12b   :  { %v631_v60 = vpack.c.bf16 %v516_v58, %v515_v59 }
 0x12d   :  { %639 = vst [vmem:[%s830_s2 + $0x38] sm:$0xff] %v631_v60  }

// kernel: graphsage_forward.7
= control target key start
LH: loop header
LB: loop body
LE: loop exit
PB: predicated region body
PF: predicated region fallthrough
CT: control target
= control target key end

     0   :  { %v880_v51 = vmov 0   ;;  %vm220_vm0 = vcmask 7168   ;;  %s1195_s0 = inlined_call_operand.vmem [shape: s8[128,128], index: 0, kind: input, shape index: {}]   ;;  %s1196_s1 = inlined_call_operand.vmem [shape: bf16[128,128], index: 1, kind: input, shape index: {}]   ;;  %s1197_s2 = inlined_call_operand.vmem [shape: f32[128,128], index: 2, kind: output, shape index: {}]  }
   0x1   :  { %v11_v0 = vld [vmem:[%s1195_s0] sm:$0xff]  ;;  %v12_v1 = vld [vmem:[%s1195_s0 + $0x8] sm:$0xff]  ;;  %v13_v14 = vld [vmem:[%s1195_s0 + $0x10] sm:$0xff]  ;;  %783 = vset.pattern.permute.xlu0 %v880_v51  ;;  %781 = vset.pattern.permute.xlu1 %v880_v51 }
   0x2   :  { %v17_v2 = vunpack.c.2.s8 %v11_v0  ;;  %v15_v3 = vunpack.c.0.s8 %v11_v0  ;;  %v19_v4 = vunpack.c.0.s8 %v12_v1  ;;  %v16_v8 = vunpack.c.1.s8 %v11_v0  ;;  %v755_v17 = vld [vmem:[%s1196_s1 + $0x38] sm:$0xff]  ;;  %v754_v19 = vld [vmem:[%s1196_s1 + $0x30] sm:$0xff]  ;;  %v753_v23 = vld [vmem:[%s1196_s1 + $0x28] sm:$0xff]  ;;  %782 = vset.pattern.permute.xlu2 %v880_v51 }
   0x3   :  { %v18_v9 = vunpack.c.3.s8 %v11_v0  ;;  %v20_v10 = vunpack.c.1.s8 %v12_v1  ;;  %v21_v15 = vunpack.c.2.s8 %v12_v1  ;;  %v22_v16 = vunpack.c.3.s8 %v12_v1  ;;  %119 = vmatpush.bf16.msra.mxu0 %v755_v17  ;;  %756 = vmatpush.bf16.msra.mxu1 %v755_v17  ;;  %v752_v27 = vld [vmem:[%s1196_s1 + $0x20] sm:$0xff]  ;;  %v14_v31 = vld [vmem:[%s1195_s0 + $0x18] sm:$0xff]  ;;  %v750_v36 = vld [vmem:[%s1196_s1 + $0x10] sm:$0xff] }
   0x4   :  { %v902_v5 = vcvt.s32.f32 %v17_v2  ;;  %v904_v6 = vcvt.s32.f32 %v15_v3  ;;  %v906_v7 = vcvt.s32.f32 %v19_v4  ;;  %v911_v11 = vcvt.s32.f32 %v16_v8  ;;  %757 = vmatpush.bf16.msra.mxu2 %v755_v17  ;;  %758 = vmatpush.bf16.msra.mxu3 %v755_v17  ;;  %v751_v32 = vld [vmem:[%s1196_s1 + $0x18] sm:$0xff]  ;;  %v749_v40 = vld [vmem:[%s1196_s1 + $0x8] sm:$0xff]  ;;  %v748_v42 = vld [vmem:[%s1196_s1] sm:$0xff] }
   0x5   :  { %v913_v12 = vcvt.s32.f32 %v18_v9  ;;  %v915_v13 = vcvt.s32.f32 %v20_v10  ;;  %v23_v18 = vunpack.c.0.s8 %v13_v14  ;;  %v929_v20 = vcvt.s32.f32 %v21_v15 }
   0x6   :  { %172 = vadd.xlane.f32.xlu1 %v902_v5  ;;  %168 = vadd.xlane.f32.xlu0 %v904_v6  ;;  %v931_v21 = vcvt.s32.f32 %v22_v16  ;;  %v24_v24 = vunpack.c.1.s8 %v13_v14  ;;  %v25_v25 = vunpack.c.2.s8 %v13_v14  ;;  %v26_v26 = vunpack.c.3.s8 %v13_v14 }
   0x7   :  { %176 = vadd.xlane.f32.xlu2 %v906_v7  ;;  %v933_v22 = vcvt.s32.f32 %v23_v18  ;;  %120 = vmatpush.bf16.msra.mxu0 %v754_v19  ;;  %v27_v33 = vunpack.c.0.s8 %v14_v31  ;;  %v28_v34 = vunpack.c.1.s8 %v14_v31  ;;  %v29_v35 = vunpack.c.2.s8 %v14_v31 }
   0x8   :  { %759 = vmatpush.bf16.msra.mxu1 %v754_v19  ;;  %760 = vmatpush.bf16.msra.mxu2 %v754_v19  ;;  %v40_v28 = vcvt.s32.f32 %v24_v24  ;;  %v41_v29 = vcvt.s32.f32 %v25_v25  ;;  %v42_v30 = vcvt.s32.f32 %v26_v26  ;;  %v30_v41 = vunpack.c.3.s8 %v14_v31 }
   0x9   :  { %761 = vmatpush.bf16.msra.mxu3 %v754_v19  ;;  %v43_v37 = vcvt.s32.f32 %v27_v33  ;;  %v44_v38 = vcvt.s32.f32 %v28_v34  ;;  %v45_v39 = vcvt.s32.f32 %v29_v35  ;;  %v47_v44 = vpack.c.bf16 %v911_v11, %v904_v6 }
   0xa   :  { %v46_v43 = vcvt.s32.f32 %v30_v41  ;;  %v49_v45 = vpack.c.bf16 %v915_v13, %v906_v7  ;;  %v48_v46 = vpack.c.bf16 %v913_v12, %v902_v5  ;;  %v51_v47 = vpack.c.bf16 %v40_v28, %v933_v22 }
   0xb   :  { %121 = vmatpush.bf16.msra.mxu0 %v753_v23  ;;  %v50_v48 = vpack.c.bf16 %v931_v21, %v929_v20  ;;  %v53_v49 = vpack.c.bf16 %v44_v38, %v43_v37  ;;  %v52_v50 = vpack.c.bf16 %v42_v30, %v41_v29 }
   0xc   :  { %762 = vmatpush.bf16.msra.mxu1 %v753_v23  ;;  %763 = vmatpush.bf16.msra.mxu2 %v753_v23  ;;  %v54_v52 = vpack.c.bf16 %v46_v43, %v45_v39 }
   0xd   :  { %764 = vmatpush.bf16.msra.mxu3 %v753_v23 }
   0xe   :  { %170 = vadd.xlane.f32.xlu0 %v911_v11  ;;  %174 = vadd.xlane.f32.xlu1 %v913_v12 }
   0xf   :  { %178 = vadd.xlane.f32.xlu2 %v915_v13  ;;  %122 = vmatpush.bf16.msra.mxu0 %v752_v27 }
  0x10   :  { %765 = vmatpush.bf16.msra.mxu1 %v752_v27  ;;  %766 = vmatpush.bf16.msra.mxu2 %v752_v27 }
  0x11   :  { %767 = vmatpush.bf16.msra.mxu3 %v752_v27 }
  0x13   :  { %123 = vmatpush.bf16.msra.mxu0 %v751_v32 }
  0x14   :  { %768 = vmatpush.bf16.msra.mxu1 %v751_v32  ;;  %769 = vmatpush.bf16.msra.mxu2 %v751_v32 }
  0x15   :  { %770 = vmatpush.bf16.msra.mxu3 %v751_v32 }
  0x16   :  { %180 = vadd.xlane.f32.xlu0 %v929_v20  ;;  %182 = vadd.xlane.f32.xlu1 %v931_v21 }
  0x17   :  { %184 = vadd.xlane.f32.xlu2 %v933_v22  ;;  %124 = vmatpush.bf16.msra.mxu0 %v750_v36 }
  0x18   :  { %771 = vmatpush.bf16.msra.mxu1 %v750_v36  ;;  %772 = vmatpush.bf16.msra.mxu2 %v750_v36 }
  0x19   :  { %773 = vmatpush.bf16.msra.mxu3 %v750_v36 }
  0x1b   :  { %125 = vmatpush.bf16.msra.mxu0 %v749_v40 }
  0x1c   :  { %774 = vmatpush.bf16.msra.mxu1 %v749_v40  ;;  %775 = vmatpush.bf16.msra.mxu2 %v749_v40 }
  0x1d   :  { %776 = vmatpush.bf16.msra.mxu3 %v749_v40 }
  0x1e   :  { %186 = vadd.xlane.f32.xlu0 %v40_v28  ;;  %188 = vadd.xlane.f32.xlu1 %v41_v29 }
  0x1f   :  { %190 = vadd.xlane.f32.xlu2 %v42_v30  ;;  %126 = vmatpush.bf16.msra.mxu0 %v748_v42 }
  0x20   :  { %777 = vmatpush.bf16.msra.mxu1 %v748_v42  ;;  %778 = vmatpush.bf16.msra.mxu2 %v748_v42 }
  0x21   :  { %779 = vmatpush.bf16.msra.mxu3 %v748_v42 }
  0x22   :  { %127 = vmatmul.bf16.vlgmr.msra.gmra.mxu0 %v47_v44 }
  0x23   :  { %137 = vmatmul.bf16.vlgmr.msra.gmra.mxu1 %v49_v45  ;;  %147 = vmatmul.bf16.vlgmr.msra.gmra.mxu2 %v51_v47 }
  0x24   :  { %157 = vmatmul.bf16.vlgmr.msra.gmra.mxu3 %v53_v49 }
  0x26   :  { %192 = vadd.xlane.f32.xlu0 %v43_v37  ;;  %194 = vadd.xlane.f32.xlu1 %v44_v38 }
  0x27   :  { %196 = vadd.xlane.f32.xlu2 %v45_v39 }
  0x2e   :  { %198 = vadd.xlane.f32.xlu0 %v46_v43 }
  0x32   :  { %132 = vmatmul.bf16.gmra.mxu0 %v48_v46 }
  0x33   :  { %142 = vmatmul.bf16.gmra.mxu1 %v50_v48  ;;  %152 = vmatmul.bf16.gmra.mxu2 %v52_v50 }
  0x34   :  { %162 = vmatmul.bf16.gmra.mxu3 %v54_v52 }
  0x79   :  { %v173_v53 = vpop.xlane.xlu1 %172  ;;  %v169_v54 = vpop.xlane.xlu0 %168 }
  0x7a   :  { %223 = vst.msk [vmem:[#allocation3 + $0x10] sm:$0xff] %vm220_vm0, %v173_v53  ;;  %v177_v55 = vpop.xlane.xlu2 %176 }
  0x7b   :  { %221 = vst.msk [vmem:[#allocation3] sm:$0xff] %vm220_vm0, %v169_v54  ;;  %v517_v54 = vlaneseq }
  0x7c   :  { %225 = vst.msk [vmem:[#allocation3 + $0x20] sm:$0xff] %vm220_vm0, %v177_v55 }
  0x81   :  { %v171_v56 = vpop.xlane.xlu0 %170  ;;  %v175_v57 = vpop.xlane.xlu1 %174  ;;  %v343_v58 = vld [vmem:[#allocation3 + $0x10] sm:$0xff] }
  0x82   :  { %222 = vst.msk [vmem:[#allocation3 + $0x8] sm:$0xff] %vm220_vm0, %v171_v56  ;;  %v179_v59 = vpop.xlane.xlu2 %178  ;;  %v359_v60 = vadd.f32 1e-06, %v343_v58  ;;  %v341_v61 = vld [vmem:[#allocation3] sm:$0xff] }
  0x83   :  { %226 = vst.msk [vmem:[#allocation3 + $0x28] sm:$0xff] %vm220_vm0, %v179_v59  ;;  %v357_v62 = vadd.f32 1e-06, %v341_v61  ;;  %v345_v63 = vld [vmem:[#allocation3 + $0x20] sm:$0xff] }
  0x84   :  { %224 = vst.msk [vmem:[#allocation3 + $0x18] sm:$0xff] %vm220_vm0, %v175_v57  ;;  %784 = vrcp.f32 %v359_v60  ;;  %v361_v0 = vadd.f32 1e-06, %v345_v63  ;;  %v984_v57 = vand.u32 127, %v517_v54 }
  0x85   :  { %786 = vrcp.f32 %v357_v62 }
  0x86   :  { %788 = vrcp.f32 %v361_v0  ;;  %vm519_vm1 = vcmp.lt.s32.totalorder %v984_v57, 16 }
  0x89   :  { %v181_v1 = vpop.xlane.xlu0 %180  ;;  %v342_v2 = vld [vmem:[#allocation3 + $0x8] sm:$0xff]  ;;  %v183_v3 = vpop.xlane.xlu1 %182 }
  0x8a   :  { %v785_v4 = vpop.eup %784  ;;  %227 = vst.msk [vmem:[#allocation3 + $0x30] sm:$0xff] %vm220_vm0, %v181_v1  ;;  %v185_v5 = vpop.xlane.xlu2 %184  ;;  %v358_v6 = vadd.f32 1e-06, %v342_v2  ;;  %v346_v17 = vld [vmem:[#allocation3 + $0x28] sm:$0xff] }
  0x8b   :  { %v787_v7 = vpop.eup %786  ;;  %417 = vperm.xlu0 %783, %v785_v4   ;;  %229 = vst.msk [vmem:[#allocation3 + $0x40] sm:$0xff] %vm220_vm0, %v185_v5  ;;  %v344_v8 = vld [vmem:[#allocation3 + $0x18] sm:$0xff]  ;;  %v362_v19 = vadd.f32 1e-06, %v346_v17 }
  0x8c   :  { %407 = vperm.xlu1 %781, %v787_v7   ;;  %790 = vrcp.f32 %v358_v6  ;;  %228 = vst.msk [vmem:[#allocation3 + $0x38] sm:$0xff] %vm220_vm0, %v183_v3  ;;  %v360_v9 = vadd.f32 1e-06, %v344_v8  ;;  %v789_v10 = vpop.eup %788 }
  0x8e   :  { %792 = vrcp.f32 %v360_v9 }
  0x91   :  { %v187_v11 = vpop.xlane.xlu0 %186  ;;  %v347_v12 = vld [vmem:[#allocation3 + $0x30] sm:$0xff]  ;;  %v189_v13 = vpop.xlane.xlu1 %188 }
  0x92   :  { %v791_v14 = vpop.eup %790  ;;  %230 = vst.msk [vmem:[#allocation3 + $0x48] sm:$0xff] %vm220_vm0, %v187_v11  ;;  %v191_v15 = vpop.xlane.xlu2 %190  ;;  %v363_v16 = vadd.f32 1e-06, %v347_v12  ;;  %v349_v18 = vld [vmem:[#allocation3 + $0x40] sm:$0xff] }
  0x93   :  { %412 = vperm.xlu2 %782, %v791_v14   ;;  %232 = vst.msk [vmem:[#allocation3 + $0x58] sm:$0xff] %vm220_vm0, %v191_v15  ;;  %v365_v20 = vadd.f32 1e-06, %v349_v18  ;;  %v348_v28 = vld [vmem:[#allocation3 + $0x38] sm:$0xff] }
  0x94   :  { %427 = vperm.xlu1 %781, %v789_v10   ;;  %794 = vrcp.f32 %v363_v16  ;;  %231 = vst.msk [vmem:[#allocation3 + $0x50] sm:$0xff] %vm220_vm0, %v189_v13  ;;  %v793_v21 = vpop.eup %792  ;;  %v364_v30 = vadd.f32 1e-06, %v348_v28 }
  0x95   :  { %796 = vrcp.f32 %v362_v19 }
  0x96   :  { %798 = vrcp.f32 %v365_v20 }
  0x99   :  { %v193_v22 = vpop.xlane.xlu0 %192  ;;  %v350_v23 = vld [vmem:[#allocation3 + $0x48] sm:$0xff]  ;;  %v195_v24 = vpop.xlane.xlu1 %194 }
  0x9a   :  { %v795_v25 = vpop.eup %794  ;;  %233 = vst.msk [vmem:[#allocation3 + $0x60] sm:$0xff] %vm220_vm0, %v193_v22  ;;  %v197_v26 = vpop.xlane.xlu2 %196  ;;  %v366_v27 = vadd.f32 1e-06, %v350_v23  ;;  %v352_v29 = vld [vmem:[#allocation3 + $0x58] sm:$0xff] }
  0x9b   :  { %422 = vperm.xlu2 %782, %v793_v21   ;;  %235 = vst.msk [vmem:[#allocation3 + $0x70] sm:$0xff] %vm220_vm0, %v197_v26  ;;  %v368_v31 = vadd.f32 1e-06, %v352_v29  ;;  %v797_v32 = vpop.eup %796  ;;  %v351_v38 = vld [vmem:[#allocation3 + $0x50] sm:$0xff] }
  0x9c   :  { %437 = vperm.xlu1 %781, %v795_v25   ;;  %800 = vrcp.f32 %v366_v27  ;;  %234 = vst.msk [vmem:[#allocation3 + $0x68] sm:$0xff] %vm220_vm0, %v195_v24  ;;  %v799_v33 = vpop.eup %798  ;;  %v367_v40 = vadd.f32 1e-06, %v351_v38 }
  0x9d   :  { %802 = vrcp.f32 %v364_v30 }
  0x9e   :  { %804 = vrcp.f32 %v368_v31 }
  0x9f   :  { %v128_v53 = vpop.f32.mrf.mxu0 }
  0xa0   :  { %v138_v55 = vpop.f32.mrf.mxu1 }
  0xa1   :  { %v199_v34 = vpop.xlane.xlu0 %198  ;;  %v353_v35 = vld [vmem:[#allocation3 + $0x60] sm:$0xff] }
  0xa2   :  { %v801_v36 = vpop.eup %800  ;;  %236 = vst.msk [vmem:[#allocation3 + $0x78] sm:$0xff] %vm220_vm0, %v199_v34  ;;  %v369_v37 = vadd.f32 1e-06, %v353_v35  ;;  %v355_v39 = vld [vmem:[#allocation3 + $0x70] sm:$0xff] }
  0xa3   :  { %432 = vperm.xlu2 %782, %v797_v32   ;;  %452 = vperm.xlu0 %783, %v801_v36   ;;  %v371_v41 = vadd.f32 1e-06, %v355_v39  ;;  %v803_v42 = vpop.eup %802  ;;  %v354_v47 = vld [vmem:[#allocation3 + $0x68] sm:$0xff] }
  0xa4   :  { %447 = vperm.xlu1 %781, %v799_v33   ;;  %806 = vrcp.f32 %v369_v37  ;;  %v805_v43 = vpop.eup %804  ;;  %v370_v48 = vadd.f32 1e-06, %v354_v47 }
  0xa5   :  { %808 = vrcp.f32 %v367_v40 }
  0xa6   :  { %810 = vrcp.f32 %v371_v41  ;;  %v148_v1 = vpop.f32.mrf.mxu2 }
  0xa7   :  { %v130_v56 = vpop.f32.mrf.mxu0  ;;  %v158_v18 = vpop.f32.mrf.mxu3 }
  0xa8   :  { %v140_v62 = vpop.f32.mrf.mxu1 }
  0xa9   :  { %v356_v44 = vld [vmem:[#allocation3 + $0x78] sm:$0xff] }
  0xaa   :  { %v807_v45 = vpop.eup %806  ;;  %v372_v46 = vadd.f32 1e-06, %v356_v44 }
  0xab   :  { %442 = vperm.xlu2 %782, %v803_v42   ;;  %467 = vperm.xlu0 %783, %v807_v45   ;;  %v809_v49 = vpop.eup %808 }
  0xac   :  { %462 = vperm.xlu1 %781, %v805_v43   ;;  %812 = vrcp.f32 %v372_v46  ;;  %v811_v50 = vpop.eup %810 }
  0xad   :  { %814 = vrcp.f32 %v370_v48 }
  0xae   :  { %v150_v15 = vpop.f32.mrf.mxu2 }
  0xaf   :  { %v133_v0 = vpop.f32.mrf.mxu0  ;;  %v160_v32 = vpop.f32.mrf.mxu3 }
  0xb0   :  { %v143_v4 = vpop.f32.mrf.mxu1 }
  0xb2   :  { %v813_v51 = vpop.eup %812 }
  0xb3   :  { %457 = vperm.xlu2 %782, %v809_v49   ;;  %482 = vperm.xlu0 %783, %v813_v51   ;;  %v815_v52 = vpop.eup %814 }
  0xb4   :  { %477 = vperm.xlu1 %781, %v811_v50  }
  0xb6   :  { %v153_v31 = vpop.f32.mrf.mxu2 }
  0xb7   :  { %v135_v9 = vpop.f32.mrf.mxu0  ;;  %v163_v47 = vpop.f32.mrf.mxu3 }
  0xb8   :  { %v145_v20 = vpop.f32.mrf.mxu1 }
  0xbb   :  { %472 = vperm.xlu2 %782, %v815_v52  }
  0xbe   :  { %v155_v52 = vpop.f32.mrf.mxu2 }
  0xed   :  { %v413_v58 = vpop.permute.xlu2 %412 }
  0xee   :  { %v486_v59 = vmul.f32 %v413_v58, %v130_v56 }
  0xf0   :  { %v502_v60 = vmax.f32 %v486_v59, 0.0 }
  0xf2   :  { %v989_v61 = vsel %vm519_vm1, %v502_v60, -1e+30 }
  0xf3   :  { %538 = vmax.xlane.f32.xlu1 %v989_v61 }
  0xf5   :  { %v423_v63 = vpop.permute.xlu2 %422 }
  0xf6   :  { %v488_v12 = vmul.f32 %v423_v63, %v135_v9 }
  0xf8   :  { %v504_v17 = vmax.f32 %v488_v12, 0.0 }
  0xfa   :  { %v1008_v24 = vsel %vm519_vm1, %v504_v17, -1e+30 }
  0xfd   :  { %v433_v2 = vpop.permute.xlu2 %432  ;;  %v418_v3 = vpop.permute.xlu0 %417 }
  0xfe   :  { %v408_v5 = vpop.permute.xlu1 %407  ;;  %v487_v6 = vmul.f32 %v418_v3, %v133_v0  ;;  %v490_v25 = vmul.f32 %v433_v2, %v140_v62  ;;  %v165_v0 = vpop.f32.mrf.mxu3 }
  0xff   :  { %v485_v7 = vmul.f32 %v408_v5, %v128_v53 }
 0x100   :  { %v503_v8 = vmax.f32 %v487_v6, 0.0  ;;  %v506_v30 = vmax.f32 %v490_v25, 0.0 }
 0x101   :  { %v501_v10 = vmax.f32 %v485_v7, 0.0 }
 0x102   :  { %v994_v11 = vsel %vm519_vm1, %v503_v8, -1e+30  ;;  %v1024_v37 = vsel %vm519_vm1, %v506_v30, -1e+30 }
 0x103   :  { %v998_v13 = vsel %vm519_vm1, %v501_v10, -1e+30  ;;  %540 = vmax.xlane.f32.xlu0 %v994_v11 }
 0x104   :  { %536 = vmax.xlane.f32.xlu2 %v998_v13 }
 0x105   :  { %v443_v14 = vpop.permute.xlu2 %442 }
 0x106   :  { %v428_v16 = vpop.permute.xlu1 %427  ;;  %v492_v22 = vmul.f32 %v443_v14, %v145_v20 }
 0x107   :  { %v489_v19 = vmul.f32 %v428_v16, %v138_v55 }
 0x108   :  { %v508_v28 = vmax.f32 %v492_v22, 0.0 }
 0x109   :  { %v505_v21 = vmax.f32 %v489_v19, 0.0 }
 0x10a   :  { %v1014_v35 = vsel %vm519_vm1, %v508_v28, -1e+30 }
 0x10b   :  { %v1004_v23 = vsel %vm519_vm1, %v505_v21, -1e+30 }
 0x10c   :  { %544 = vmax.xlane.f32.xlu1 %v1004_v23  ;;  %542 = vmax.xlane.f32.xlu2 %v1008_v24 }
 0x10d   :  { %v458_v26 = vpop.permute.xlu2 %457 }
 0x10e   :  { %v438_v27 = vpop.permute.xlu1 %437  ;;  %v495_v34 = vmul.f32 %v458_v26, %v153_v31 }
 0x10f   :  { %v491_v29 = vmul.f32 %v438_v27, %v143_v4 }
 0x110   :  { %v511_v41 = vmax.f32 %v495_v34, 0.0 }
 0x111   :  { %v507_v33 = vmax.f32 %v491_v29, 0.0 }
 0x112   :  { %v1033_v49 = vsel %vm519_vm1, %v511_v41, -1e+30 }
 0x113   :  { %v1018_v36 = vsel %vm519_vm1, %v507_v33, -1e+30 }
 0x114   :  { %550 = vmax.xlane.f32.xlu1 %v1014_v35  ;;  %548 = vmax.xlane.f32.xlu0 %v1018_v36 }
 0x115   :  { %546 = vmax.xlane.f32.xlu2 %v1024_v37  ;;  %v453_v38 = vpop.permute.xlu0 %452  ;;  %v473_v43 = vpop.permute.xlu2 %472 }
 0x116   :  { %v448_v39 = vpop.permute.xlu1 %447  ;;  %v494_v40 = vmul.f32 %v453_v38, %v150_v15  ;;  %v498_v48 = vmul.f32 %v473_v43, %v160_v32 }
 0x117   :  { %v493_v42 = vmul.f32 %v448_v39, %v148_v1 }
 0x118   :  { %v510_v44 = vmax.f32 %v494_v40, 0.0  ;;  %v514_v55 = vmax.f32 %v498_v48, 0.0 }
 0x119   :  { %v509_v45 = vmax.f32 %v493_v42, 0.0 }
 0x11a   :  { %v1029_v46 = vsel %vm519_vm1, %v510_v44, -1e+30  ;;  %v1048_v62 = vsel %vm519_vm1, %v514_v55, -1e+30 }
 0x11b   :  { %v1037_v50 = vsel %vm519_vm1, %v509_v45, -1e+30 }
 0x11c   :  { %556 = vmax.xlane.f32.xlu1 %v1033_v49  ;;  %554 = vmax.xlane.f32.xlu0 %v1029_v46 }
 0x11d   :  { %552 = vmax.xlane.f32.xlu2 %v1037_v50  ;;  %v468_v51 = vpop.permute.xlu0 %467 }
 0x11e   :  { %v463_v53 = vpop.permute.xlu1 %462  ;;  %v497_v54 = vmul.f32 %v468_v51, %v158_v18 }
 0x11f   :  { %v496_v56 = vmul.f32 %v463_v53, %v155_v52 }
 0x120   :  { %v513_v58 = vmax.f32 %v497_v54, 0.0 }
 0x121   :  { %v512_v59 = vmax.f32 %v496_v56, 0.0 }
 0x122   :  { %v1044_v60 = vsel %vm519_vm1, %v513_v58, -1e+30 }
 0x123   :  { %v1052_v63 = vsel %vm519_vm1, %v512_v59, -1e+30 }
 0x124   :  { %562 = vmax.xlane.f32.xlu1 %v1048_v62  ;;  %560 = vmax.xlane.f32.xlu0 %v1044_v60 }
 0x125   :  { %558 = vmax.xlane.f32.xlu2 %v1052_v63  ;;  %v483_v1 = vpop.permute.xlu0 %482 }
 0x126   :  { %v478_v2 = vpop.permute.xlu1 %477  ;;  %v500_v3 = vmul.f32 %v483_v1, %v165_v0 }
 0x127   :  { %v499_v4 = vmul.f32 %v478_v2, %v163_v47 }
 0x128   :  { %v516_v5 = vmax.f32 %v500_v3, 0.0 }
 0x129   :  { %v515_v6 = vmax.f32 %v499_v4, 0.0 }
 0x12a   :  { %v1059_v7 = vsel %vm519_vm1, %v516_v5, -1e+30 }
 0x12b   :  { %v1063_v8 = vsel %vm519_vm1, %v515_v6, -1e+30 }
 0x12c   :  { %566 = vmax.xlane.f32.xlu0 %v1059_v7 }
 0x12d   :  { %564 = vmax.xlane.f32.xlu2 %v1063_v8 }
 0x166   :  { %v539_v9 = vpop.xlane.xlu1 %538 }
 0x167   :  { %v1068_v10 = vsub.f32 %v989_v61, %v539_v9 }
 0x169   :  { %v586_v12 = vmul.f32 1.442695, %v1068_v10 }
 0x16b   :  { %816 = vpow2.f32 %v586_v12 }
 0x171   :  { %v817_v14 = vpop.eup %816 }
 0x172   :  { %618 = vadd.xlane.f32.xlu2 %v817_v14 }
 0x176   :  { %v541_v15 = vpop.xlane.xlu0 %540 }
 0x177   :  { %v537_v16 = vpop.xlane.xlu2 %536  ;;  %v1072_v17 = vsub.f32 %v994_v11, %v541_v15 }
 0x178   :  { %v1075_v57 = vsub.f32 %v998_v13, %v537_v16 }
 0x179   :  { %v588_v18 = vmul.f32 1.442695, %v1072_v17 }
 0x17a   :  { %v584_v19 = vmul.f32 1.442695, %v1075_v57 }
 0x17b   :  { %818 = vpow2.f32 %v588_v18 }
 0x17c   :  { %820 = vpow2.f32 %v584_v19 }
 0x17f   :  { %v545_v61 = vpop.xlane.xlu1 %544  ;;  %v543_v20 = vpop.xlane.xlu2 %542 }
 0x180   :  { %v1080_v21 = vsub.f32 %v1004_v23, %v545_v61  ;;  %v1083_v22 = vsub.f32 %v1008_v24, %v543_v20 }
 0x181   :  { %v819_v25 = vpop.eup %818 }
 0x182   :  { %v821_v11 = vpop.eup %820  ;;  %v592_v26 = vmul.f32 1.442695, %v1080_v21  ;;  %v590_v13 = vmul.f32 1.442695, %v1083_v22  ;;  %620 = vadd.xlane.f32.xlu0 %v819_v25 }
 0x183   :  { %616 = vadd.xlane.f32.xlu1 %v821_v11 }
 0x184   :  { %822 = vpow2.f32 %v592_v26 }
 0x185   :  { %824 = vpow2.f32 %v590_v13 }
 0x187   :  { %v551_v27 = vpop.xlane.xlu1 %550  ;;  %v549_v28 = vpop.xlane.xlu0 %548 }
 0x188   :  { %v1088_v29 = vsub.f32 %v1014_v35, %v551_v27  ;;  %v1091_v23 = vsub.f32 %v1018_v36, %v549_v28  ;;  %v547_v24 = vpop.xlane.xlu2 %546 }
 0x189   :  { %v1094_v30 = vsub.f32 %v1024_v37, %v547_v24 }
 0x18a   :  { %v823_v31 = vpop.eup %822  ;;  %v598_v32 = vmul.f32 1.442695, %v1088_v29  ;;  %v596_v33 = vmul.f32 1.442695, %v1091_v23 }
 0x18b   :  { %v825_v34 = vpop.eup %824  ;;  %v594_v38 = vmul.f32 1.442695, %v1094_v30  ;;  %624 = vadd.xlane.f32.xlu2 %v823_v31 }
 0x18c   :  { %826 = vpow2.f32 %v598_v32  ;;  %622 = vadd.xlane.f32.xlu1 %v825_v34 }
 0x18d   :  { %828 = vpow2.f32 %v596_v33 }
 0x18e   :  { %830 = vpow2.f32 %v594_v38 }
 0x18f   :  { %v557_v35 = vpop.xlane.xlu1 %556  ;;  %v555_v36 = vpop.xlane.xlu0 %554 }
 0x190   :  { %v1100_v39 = vsub.f32 %v1033_v49, %v557_v35  ;;  %v1103_v37 = vsub.f32 %v1029_v46, %v555_v36  ;;  %v553_v40 = vpop.xlane.xlu2 %552 }
 0x191   :  { %v1106_v41 = vsub.f32 %v1037_v50, %v553_v40 }
 0x192   :  { %v827_v42 = vpop.eup %826  ;;  %v604_v43 = vmul.f32 1.442695, %v1100_v39  ;;  %v602_v44 = vmul.f32 1.442695, %v1103_v37 }
 0x193   :  { %v829_v45 = vpop.eup %828  ;;  %v600_v47 = vmul.f32 1.442695, %v1106_v41  ;;  %630 = vadd.xlane.f32.xlu2 %v827_v42 }
 0x194   :  { %v831_v48 = vpop.eup %830  ;;  %832 = vpow2.f32 %v604_v43  ;;  %628 = vadd.xlane.f32.xlu1 %v829_v45 }
 0x195   :  { %834 = vpow2.f32 %v602_v44  ;;  %626 = vadd.xlane.f32.xlu0 %v831_v48 }
 0x196   :  { %836 = vpow2.f32 %v600_v47 }
 0x197   :  { %v563_v46 = vpop.xlane.xlu1 %562  ;;  %v561_v49 = vpop.xlane.xlu0 %560 }
 0x198   :  { %v1112_v50 = vsub.f32 %v1048_v62, %v563_v46  ;;  %v1115_v51 = vsub.f32 %v1044_v60, %v561_v49  ;;  %v559_v52 = vpop.xlane.xlu2 %558 }
 0x199   :  { %v1118_v53 = vsub.f32 %v1052_v63, %v559_v52 }
 0x19a   :  { %v833_v54 = vpop.eup %832  ;;  %v610_v55 = vmul.f32 1.442695, %v1112_v50  ;;  %v608_v56 = vmul.f32 1.442695, %v1115_v51 }
 0x19b   :  { %v835_v58 = vpop.eup %834  ;;  %v606_v59 = vmul.f32 1.442695, %v1118_v53  ;;  %636 = vadd.xlane.f32.xlu2 %v833_v54 }
 0x19c   :  { %v837_v0 = vpop.eup %836  ;;  %838 = vpow2.f32 %v610_v55  ;;  %634 = vadd.xlane.f32.xlu1 %v835_v58 }
 0x19d   :  { %840 = vpow2.f32 %v608_v56  ;;  %632 = vadd.xlane.f32.xlu0 %v837_v0 }
 0x19e   :  { %842 = vpow2.f32 %v606_v59 }
 0x19f   :  { %v567_v60 = vpop.xlane.xlu0 %566 }
 0x1a0   :  { %v1124_v62 = vsub.f32 %v1059_v7, %v567_v60  ;;  %v565_v63 = vpop.xlane.xlu2 %564 }
 0x1a1   :  { %v1127_v1 = vsub.f32 %v1063_v8, %v565_v63 }
 0x1a2   :  { %v839_v2 = vpop.eup %838  ;;  %v614_v3 = vmul.f32 1.442695, %v1124_v62 }
 0x1a3   :  { %v841_v4 = vpop.eup %840  ;;  %v612_v5 = vmul.f32 1.442695, %v1127_v1  ;;  %642 = vadd.xlane.f32.xlu2 %v839_v2 }
 0x1a4   :  { %v843_v6 = vpop.eup %842  ;;  %844 = vpow2.f32 %v614_v3  ;;  %640 = vadd.xlane.f32.xlu1 %v841_v4 }
 0x1a5   :  { %846 = vpow2.f32 %v612_v5  ;;  %638 = vadd.xlane.f32.xlu0 %v843_v6 }
 0x1aa   :  { %v845_v9 = vpop.eup %844 }
 0x1ab   :  { %v847_v12 = vpop.eup %846 }
 0x1ac   :  { %646 = vadd.xlane.f32.xlu1 %v845_v9 }
 0x1ad   :  { %644 = vadd.xlane.f32.xlu0 %v847_v12 }
 0x1e5   :  { %v619_v7 = vpop.xlane.xlu2 %618 }
 0x1e6   :  { %848 = vlog2.f32 %v619_v7 }
 0x1ec   :  { %v849_v8 = vpop.eup %848 }
 0x1ed   :  { %v651_v14 = vmul.f32 0.6931472, %v849_v8 }
 0x1ef   :  { %v681_v15 = vsub.f32 %v1068_v10, %v651_v14 }
 0x1f1   :  { %697 = vst [vmem:[%s1197_s2 + $0x8] sm:$0xff] %v681_v15 }
 0x1f5   :  { %v621_v16 = vpop.xlane.xlu0 %620 }
 0x1f6   :  { %v617_v18 = vpop.xlane.xlu1 %616  ;;  %850 = vlog2.f32 %v621_v16 }
 0x1f7   :  { %852 = vlog2.f32 %v617_v18 }
 0x1fc   :  { %v851_v19 = vpop.eup %850 }
 0x1fd   :  { %v853_v61 = vpop.eup %852  ;;  %v653_v20 = vmul.f32 0.6931472, %v851_v19 }
 0x1fe   :  { %v649_v25 = vmul.f32 0.6931472, %v853_v61  ;;  %v625_v11 = vpop.xlane.xlu2 %624 }
 0x1ff   :  { %v682_v26 = vsub.f32 %v1072_v17, %v653_v20  ;;  %v623_v13 = vpop.xlane.xlu1 %622  ;;  %854 = vlog2.f32 %v625_v11 }
 0x200   :  { %v680_v27 = vsub.f32 %v1075_v57, %v649_v25  ;;  %856 = vlog2.f32 %v623_v13 }
 0x201   :  { %698 = vst [vmem:[%s1197_s2 + $0x10] sm:$0xff] %v682_v26 }
 0x202   :  { %696 = vst [vmem:[%s1197_s2] sm:$0xff] %v680_v27 }
 0x205   :  { %v855_v10 = vpop.eup %854 }
 0x206   :  { %v857_v28 = vpop.eup %856  ;;  %v657_v24 = vmul.f32 0.6931472, %v855_v10  ;;  %v631_v31 = vpop.xlane.xlu2 %630 }
 0x207   :  { %v655_v32 = vmul.f32 0.6931472, %v857_v28  ;;  %v629_v33 = vpop.xlane.xlu1 %628  ;;  %858 = vlog2.f32 %v631_v31 }
 0x208   :  { %v684_v17 = vsub.f32 %v1080_v21, %v657_v24  ;;  %860 = vlog2.f32 %v629_v33  ;;  %v627_v57 = vpop.xlane.xlu0 %626 }
 0x209   :  { %v683_v34 = vsub.f32 %v1083_v22, %v655_v32  ;;  %862 = vlog2.f32 %v627_v57 }
 0x20a   :  { %700 = vst [vmem:[%s1197_s2 + $0x20] sm:$0xff] %v684_v17 }
 0x20b   :  { %699 = vst [vmem:[%s1197_s2 + $0x18] sm:$0xff] %v683_v34 }
 0x20d   :  { %v859_v38 = vpop.eup %858 }
 0x20e   :  { %v861_v35 = vpop.eup %860  ;;  %v663_v36 = vmul.f32 0.6931472, %v859_v38  ;;  %v637_v40 = vpop.xlane.xlu2 %636 }
 0x20f   :  { %v863_v42 = vpop.eup %862  ;;  %v661_v43 = vmul.f32 0.6931472, %v861_v35  ;;  %v635_v21 = vpop.xlane.xlu1 %634  ;;  %864 = vlog2.f32 %v637_v40 }
 0x210   :  { %v659_v44 = vmul.f32 0.6931472, %v863_v42  ;;  %v687_v22 = vsub.f32 %v1088_v29, %v663_v36  ;;  %866 = vlog2.f32 %v635_v21  ;;  %v633_v45 = vpop.xlane.xlu0 %632 }
 0x211   :  { %v686_v47 = vsub.f32 %v1091_v23, %v661_v43  ;;  %868 = vlog2.f32 %v633_v45 }
 0x212   :  { %v685_v48 = vsub.f32 %v1094_v30, %v659_v44  ;;  %703 = vst [vmem:[%s1197_s2 + $0x38] sm:$0xff] %v687_v22 }
 0x213   :  { %702 = vst [vmem:[%s1197_s2 + $0x30] sm:$0xff] %v686_v47 }
 0x214   :  { %701 = vst [vmem:[%s1197_s2 + $0x28] sm:$0xff] %v685_v48 }
 0x215   :  { %v865_v29 = vpop.eup %864 }
 0x216   :  { %v867_v46 = vpop.eup %866  ;;  %v669_v49 = vmul.f32 0.6931472, %v865_v29  ;;  %v643_v52 = vpop.xlane.xlu2 %642 }
 0x217   :  { %v869_v23 = vpop.eup %868  ;;  %v667_v54 = vmul.f32 0.6931472, %v867_v46  ;;  %v641_v55 = vpop.xlane.xlu1 %640  ;;  %870 = vlog2.f32 %v643_v52 }
 0x218   :  { %v665_v30 = vmul.f32 0.6931472, %v869_v23  ;;  %v690_v56 = vsub.f32 %v1100_v39, %v669_v49  ;;  %872 = vlog2.f32 %v641_v55  ;;  %v639_v58 = vpop.xlane.xlu0 %638 }
 0x219   :  { %v689_v59 = vsub.f32 %v1103_v37, %v667_v54  ;;  %874 = vlog2.f32 %v639_v58 }
 0x21a   :  { %v688_v0 = vsub.f32 %v1106_v41, %v665_v30  ;;  %706 = vst [vmem:[%s1197_s2 + $0x50] sm:$0xff] %v690_v56 }
 0x21b   :  { %705 = vst [vmem:[%s1197_s2 + $0x48] sm:$0xff] %v689_v59 }
 0x21c   :  { %704 = vst [vmem:[%s1197_s2 + $0x40] sm:$0xff] %v688_v0 }
 0x21d   :  { %v871_v39 = vpop.eup %870 }
 0x21e   :  { %v873_v60 = vpop.eup %872  ;;  %v675_v63 = vmul.f32 0.6931472, %v871_v39 }
 0x21f   :  { %v875_v2 = vpop.eup %874  ;;  %v673_v37 = vmul.f32 0.6931472, %v873_v60  ;;  %v647_v3 = vpop.xlane.xlu1 %646 }
 0x220   :  { %v671_v4 = vmul.f32 0.6931472, %v875_v2  ;;  %v693_v41 = vsub.f32 %v1112_v50, %v675_v63  ;;  %876 = vlog2.f32 %v647_v3  ;;  %v645_v5 = vpop.xlane.xlu0 %644 }
 0x221   :  { %v692_v6 = vsub.f32 %v1115_v51, %v673_v37  ;;  %878 = vlog2.f32 %v645_v5 }
 0x222   :  { %v691_v9 = vsub.f32 %v1118_v53, %v671_v4  ;;  %709 = vst [vmem:[%s1197_s2 + $0x68] sm:$0xff] %v693_v41 }
 0x223   :  { %708 = vst [vmem:[%s1197_s2 + $0x60] sm:$0xff] %v692_v6 }
 0x224   :  { %707 = vst [vmem:[%s1197_s2 + $0x58] sm:$0xff] %v691_v9 }
 0x226   :  { %v877_v50 = vpop.eup %876 }
 0x227   :  { %v879_v12 = vpop.eup %878  ;;  %v679_v7 = vmul.f32 0.6931472, %v877_v50 }
 0x228   :  { %v677_v8 = vmul.f32 0.6931472, %v879_v12 }
 0x229   :  { %v695_v51 = vsub.f32 %v1124_v62, %v679_v7 }
 0x22a   :  { %v694_v53 = vsub.f32 %v1127_v1, %v677_v8 }
 0x22b   :  { %711 = vst [vmem:[%s1197_s2 + $0x78] sm:$0xff] %v695_v51 }
 0x22c   :  { %710 = vst [vmem:[%s1197_s2 + $0x70] sm:$0xff] %v694_v53 }

</bundles_post_ra>
